<compile_context>
chip_gen: v5e
topology: v5e:2x2
jax: 0.10.0
libtpu: 0.0.40
codegen_flags: <defaults>
</compile_context>

<pallas_src>
import jax
import jax.numpy as jnp
from jax.experimental import pallas as pl
from jax.experimental.pallas import tpu as pltpu

UNITS1 = 400
UNITS2 = 300


def _critic_kernel(state_ref, action_ref,
                   ws14_ref, wa14_ref, b14_ref,
                   w2_ref, b2_ref, w5_ref, b5_ref,
                   w36_ref, b36_ref,
                   out_ref):
    """Twin-Q MLP over one batch tile. Weights are VMEM-resident across the grid."""
    u1 = w2_ref.shape[0]  # fc1/fc4 output width

    # ---- Layer 1, both heads fused along the lane (output) axis ----
    # state/action kept separate -> no concat, no (B, S+A) HBM round-trip.
    s = state_ref[...].astype(jnp.bfloat16)
    a = action_ref[...].astype(jnp.bfloat16)
    h1 = jnp.dot(s, ws14_ref[...], preferred_element_type=jnp.float32)
    h1 = h1 + jnp.dot(a, wa14_ref[...], preferred_element_type=jnp.float32)
    h1 = jnp.maximum(h1 + b14_ref[...], 0.0)          # (TB, 2*u1) float32

    h = h1[:, :u1]                                     # head 1 activations
    g = h1[:, u1:]                                     # head 2 activations

    # ---- Layer 2 (two heads, bf16 MXU inputs, f32 accumulation) ----
    h2 = jnp.dot(h.astype(jnp.bfloat16), w2_ref[...],
                 preferred_element_type=jnp.float32) + b2_ref[...]
    h2 = jnp.maximum(h2, 0.0)
    g2 = jnp.dot(g.astype(jnp.bfloat16), w5_ref[...],
                 preferred_element_type=jnp.float32) + b5_ref[...]
    g2 = jnp.maximum(g2, 0.0)

    # ---- Layer 3 (N=1): VPU multiply + lane reduction, all float32 ----
    w36 = w36_ref[...]                                 # (2, u2) f32: rows = [w3, w6]
    q1 = jnp.sum(h2 * w36[0:1, :], axis=-1, keepdims=True) + b36_ref[0]
    q2 = jnp.sum(g2 * w36[1:2, :], axis=-1, keepdims=True) + b36_ref[1]

    # Lane-packed output block (B, 2); one output DMA.
    out_ref[:, 0:1] = q1
    out_ref[:, 1:2] = q2


def init_critic_params(key, state_size, action_size,
                       fc1_units=UNITS1, fc2_units=UNITS2):
    """Deterministic init mirroring PyTorch nn.Linear defaults.
    Weights stored as (in, out); biases as (1, out). All float32."""
    in_dim = state_size + action_size

    def linear(k, fan_in, fan_out, lim=None):
        kw, kb = jax.random.split(k)
        if lim is None:
            lim = 1.0 / jnp.sqrt(jnp.float32(fan_in))
        w = jax.random.uniform(kw, (fan_in, fan_out), jnp.float32, -lim, lim)
        b = jax.random.uniform(kb, (1, fan_out), jnp.float32, -lim, lim)
        return w, b

    keys = jax.random.split(key, 6)
    w1, b1 = linear(keys[0], in_dim, fc1_units)
    w2, b2 = linear(keys[1], fc1_units, fc2_units)
    w3, b3 = linear(keys[2], fc2_units, 1, lim=3e-3)
    w4, b4 = linear(keys[3], in_dim, fc1_units)
    w5, b5 = linear(keys[4], fc1_units, fc2_units)
    w6, b6 = linear(keys[5], fc2_units, 1, lim=3e-3)
    return dict(w1=w1, b1=b1, w2=w2, b2=b2, w3=w3, b3=b3,
                w4=w4, b4=b4, w5=w5, b5=b5, w6=w6, b6=b6)


def pack_critic_params(params, state_size, weight_dtype=jnp.bfloat16):
    """One-time (outside the hot path) packing into the kernel's fused layout."""
    w14 = jnp.concatenate([params["w1"], params["w4"]], axis=1)      # (S+A, 2*U1)
    return dict(
        ws14=w14[:state_size].astype(weight_dtype),                   # (S, 2*U1)
        wa14=w14[state_size:].astype(weight_dtype),                   # (A, 2*U1)
        b14=jnp.concatenate([params["b1"], params["b4"]],
                            axis=1).astype(jnp.float32),              # (1, 2*U1)
        w2=params["w2"].astype(weight_dtype),                         # (U1, U2)
        b2=params["b2"].astype(jnp.float32),                          # (1, U2)
        w5=params["w5"].astype(weight_dtype),                         # (U1, U2)
        b5=params["b5"].astype(jnp.float32),                          # (1, U2)
        w36=jnp.concatenate([params["w3"], params["w6"]],
                            axis=1).T.astype(jnp.float32),            # (2, U2)
        b36=jnp.concatenate([params["b3"], params["b6"]],
                            axis=1).reshape(2).astype(jnp.float32),   # (2,)
    )


def critic_forward(state, action, packed, *, batch_tile=None, interpret=False):
    """Returns (q1, q2), each (B, 1) float32."""
    B, S = state.shape
    A = action.shape[1]

    # Conservative cross-generation default batch tile (fits scoped VMEM on
    # v5e/v6e/v7x). Raise batch_tile (and vmem_limit_bytes) on v6e for very
    # large batches if desired.
    if batch_tile is None:
        batch_tile = B if B <= 2048 else 2048
    if batch_tile >= B:
        batch_tile = B
    else:
        batch_tile = max(8, (batch_tile // 8) * 8)   # (8, 128) tiling constraint
    grid = (pl.cdiv(B, batch_tile),)

    def resident(arr):
        nd = arr.ndim
        return pl.BlockSpec(arr.shape, lambda i, _nd=nd: (0,) * _nd)

    in_specs = [
        pl.BlockSpec((batch_tile, S), lambda i: (i, 0)),   # state  (batch-tiled)
        pl.BlockSpec((batch_tile, A), lambda i: (i, 0)),   # action (batch-tiled)
        resident(packed["ws14"]),
        resident(packed["wa14"]),
        resident(packed["b14"]),
        resident(packed["w2"]),
        resident(packed["b2"]),
        resident(packed["w5"]),
        resident(packed["b5"]),
        resident(packed["w36"]),
        pl.BlockSpec(memory_space=pltpu.MemorySpace.SMEM),  # b36 scalars
    ]
    out_specs = pl.BlockSpec((batch_tile, 2), lambda i: (i, 0))

    out = pl.pallas_call(
        _critic_kernel,
        out_shape=jax.ShapeDtypeStruct((B, 2), jnp.float32),
        grid=grid,
        in_specs=in_specs,
        out_specs=out_specs,
        compiler_params=pltpu.CompilerParams(
            dimension_semantics=("parallel",)),
        interpret=interpret,
    )(state, action,
      packed["ws14"], packed["wa14"], packed["b14"],
      packed["w2"], packed["b2"], packed["w5"], packed["b5"],
      packed["w36"], packed["b36"])

    return out[:, 0:1], out[:, 1:2]


def critic_forward_ref(state, action, params):
    """Pure-JAX float32 reference (spec semantics)."""
    xu = jnp.concatenate([state, action], axis=1)
    h = jnp.maximum(xu @ params["w1"] + params["b1"], 0.0)
    h = jnp.maximum(h @ params["w2"] + params["b2"], 0.0)
    q1 = h @ params["w3"] + params["b3"]
    g = jnp.maximum(xu @ params["w4"] + params["b4"], 0.0)
    g = jnp.maximum(g @ params["w5"] + params["b5"], 0.0)
    q2 = g @ params["w6"] + params["b6"]
    return q1, q2


if __name__ == "__main__":
    key = jax.random.PRNGKey(0)
    k_params, k_state, k_action = jax.random.split(key, 3)

    batch = 8
    state_size = 16
    action_size = 8

    params = init_critic_params(k_params, state_size, action_size)
    packed = pack_critic_params(params, state_size)

    state = jax.random.normal(k_state, (batch, state_size), jnp.float32)
    action = jax.random.normal(k_action, (batch, action_size), jnp.float32)

    q1, q2 = jax.jit(critic_forward)(state, action, packed)
    jax.block_until_ready((q1, q2))

    q1_ref, q2_ref = critic_forward_ref(state, action, params)
    assert q1.shape == (batch, 1) and q2.shape == (batch, 1)
    # bf16 weights / bf16 MXU operands with f32 accumulation -> relaxed tolerance
    # vs. the full-f32 reference (per review guidance).
    assert jnp.allclose(q1, q1_ref, atol=2e-3, rtol=5e-2), \
        float(jnp.max(jnp.abs(q1 - q1_ref)))
    assert jnp.allclose(q2, q2_ref, atol=2e-3, rtol=5e-2), \
        float(jnp.max(jnp.abs(q2 - q2_ref)))

    print("KERNEL_OK")
</pallas_src>

<mosaic_0001>
module attributes {stable_mosaic.version = 11 : i64} {
  func.func @_critic_kernel(%arg0: i32, %arg1: memref<8x16xf32, #tpu.memory_space<vmem>>, %arg2: memref<8x8xf32, #tpu.memory_space<vmem>>, %arg3: memref<16x800xbf16, #tpu.memory_space<vmem>>, %arg4: memref<8x800xbf16, #tpu.memory_space<vmem>>, %arg5: memref<1x800xf32, #tpu.memory_space<vmem>>, %arg6: memref<400x300xbf16, #tpu.memory_space<vmem>>, %arg7: memref<1x300xf32, #tpu.memory_space<vmem>>, %arg8: memref<400x300xbf16, #tpu.memory_space<vmem>>, %arg9: memref<1x300xf32, #tpu.memory_space<vmem>>, %arg10: memref<2x300xf32, #tpu.memory_space<vmem>>, %arg11: memref<2xf32, #tpu.memory_space<smem>>, %arg12: memref<8x2xf32, #tpu.memory_space<vmem>>) attributes {dimension_semantics = [#tpu.dimension_semantics<parallel>], iteration_bounds = array<i64: 1>, scalar_prefetch = 0 : i64, scratch_operands = 0 : i64, tpu.core_type = #tpu.core_type<tc>, window_params = [{transform_indices = @transform_0, window_bounds = array<i64: 8, 16>}, {transform_indices = @transform_1, window_bounds = array<i64: 8, 8>}, {pipeline_mode = #tpu.pipeline_mode<synchronous>, transform_indices = @transform_2, window_bounds = array<i64: 16, 800>}, {pipeline_mode = #tpu.pipeline_mode<synchronous>, transform_indices = @transform_3, window_bounds = array<i64: 8, 800>}, {pipeline_mode = #tpu.pipeline_mode<synchronous>, transform_indices = @transform_4, window_bounds = array<i64: 1, 800>}, {pipeline_mode = #tpu.pipeline_mode<synchronous>, transform_indices = @transform_5, window_bounds = array<i64: 400, 300>}, {pipeline_mode = #tpu.pipeline_mode<synchronous>, transform_indices = @transform_6, window_bounds = array<i64: 1, 300>}, {pipeline_mode = #tpu.pipeline_mode<synchronous>, transform_indices = @transform_7, window_bounds = array<i64: 400, 300>}, {pipeline_mode = #tpu.pipeline_mode<synchronous>, transform_indices = @transform_8, window_bounds = array<i64: 1, 300>}, {pipeline_mode = #tpu.pipeline_mode<synchronous>, transform_indices = @transform_9, window_bounds = array<i64: 2, 300>}, {transform_indices = @transform_10, window_bounds = array<i64: 2>}, {transform_indices = @transform_11, window_bounds = array<i64: 8, 2>}]} {
    %c0 = arith.constant 0 : index
    %c0_0 = arith.constant 0 : index
    %0 = vector.load %arg1[%c0, %c0_0] : memref<8x16xf32, #tpu.memory_space<vmem>>, vector<8x16xf32>
    %1 = arith.truncf %0 : vector<8x16xf32> to vector<8x16xbf16>
    %c0_1 = arith.constant 0 : index
    %c0_2 = arith.constant 0 : index
    %2 = vector.load %arg2[%c0_1, %c0_2] : memref<8x8xf32, #tpu.memory_space<vmem>>, vector<8x8xf32>
    %3 = arith.truncf %2 : vector<8x8xf32> to vector<8x8xbf16>
    %c0_3 = arith.constant 0 : index
    %c0_4 = arith.constant 0 : index
    %4 = vector.load %arg3[%c0_3, %c0_4] : memref<16x800xbf16, #tpu.memory_space<vmem>>, vector<16x800xbf16>
    %cst = arith.constant dense<0.000000e+00> : vector<8x800xf32>
    %5 = tpu.matmul %1, %4, %cst {dimension_numbers = #tpu.dot_dimension_numbers<[1], [0], [0], [1], [0, 0, 1, 1], [], []>} : vector<8x16xbf16>, vector<16x800xbf16>, vector<8x800xf32> -> vector<8x800xf32>
    %c0_5 = arith.constant 0 : index
    %c0_6 = arith.constant 0 : index
    %6 = vector.load %arg4[%c0_5, %c0_6] : memref<8x800xbf16, #tpu.memory_space<vmem>>, vector<8x800xbf16>
    %cst_7 = arith.constant dense<0.000000e+00> : vector<8x800xf32>
    %7 = tpu.matmul %3, %6, %cst_7 {dimension_numbers = #tpu.dot_dimension_numbers<[1], [0], [0], [1], [0, 0, 1, 1], [], []>} : vector<8x8xbf16>, vector<8x800xbf16>, vector<8x800xf32> -> vector<8x800xf32>
    %8 = arith.addf %5, %7 : vector<8x800xf32>
    %c0_8 = arith.constant 0 : index
    %c0_9 = arith.constant 0 : index
    %9 = vector.load %arg5[%c0_8, %c0_9] : memref<1x800xf32, #tpu.memory_space<vmem>>, vector<1x800xf32>
    %10 = vector.broadcast %9 : vector<1x800xf32> to vector<8x800xf32>
    %11 = arith.addf %8, %10 : vector<8x800xf32>
    %cst_10 = arith.constant 0.000000e+00 : f32
    %12 = vector.broadcast %cst_10 : f32 to vector<8x800xf32>
    %13 = arith.maximumf %11, %12 : vector<8x800xf32>
    %14 = vector.extract_strided_slice %13 {offsets = [0, 0], sizes = [8, 400], strides = [1, 1]} : vector<8x800xf32> to vector<8x400xf32>
    %15 = vector.extract_strided_slice %13 {offsets = [0, 400], sizes = [8, 400], strides = [1, 1]} : vector<8x800xf32> to vector<8x400xf32>
    %16 = arith.truncf %14 : vector<8x400xf32> to vector<8x400xbf16>
    %c0_11 = arith.constant 0 : index
    %c0_12 = arith.constant 0 : index
    %17 = vector.load %arg6[%c0_11, %c0_12] : memref<400x300xbf16, #tpu.memory_space<vmem>>, vector<400x300xbf16>
    %cst_13 = arith.constant dense<0.000000e+00> : vector<8x300xf32>
    %18 = tpu.matmul %16, %17, %cst_13 {dimension_numbers = #tpu.dot_dimension_numbers<[1], [0], [0], [1], [0, 0, 1, 1], [], []>} : vector<8x400xbf16>, vector<400x300xbf16>, vector<8x300xf32> -> vector<8x300xf32>
    %c0_14 = arith.constant 0 : index
    %c0_15 = arith.constant 0 : index
    %19 = vector.load %arg7[%c0_14, %c0_15] : memref<1x300xf32, #tpu.memory_space<vmem>>, vector<1x300xf32>
    %20 = vector.broadcast %19 : vector<1x300xf32> to vector<8x300xf32>
    %21 = arith.addf %18, %20 : vector<8x300xf32>
    %cst_16 = arith.constant 0.000000e+00 : f32
    %22 = vector.broadcast %cst_16 : f32 to vector<8x300xf32>
    %23 = arith.maximumf %21, %22 : vector<8x300xf32>
    %24 = arith.truncf %15 : vector<8x400xf32> to vector<8x400xbf16>
    %c0_17 = arith.constant 0 : index
    %c0_18 = arith.constant 0 : index
    %25 = vector.load %arg8[%c0_17, %c0_18] : memref<400x300xbf16, #tpu.memory_space<vmem>>, vector<400x300xbf16>
    %cst_19 = arith.constant dense<0.000000e+00> : vector<8x300xf32>
    %26 = tpu.matmul %24, %25, %cst_19 {dimension_numbers = #tpu.dot_dimension_numbers<[1], [0], [0], [1], [0, 0, 1, 1], [], []>} : vector<8x400xbf16>, vector<400x300xbf16>, vector<8x300xf32> -> vector<8x300xf32>
    %c0_20 = arith.constant 0 : index
    %c0_21 = arith.constant 0 : index
    %27 = vector.load %arg9[%c0_20, %c0_21] : memref<1x300xf32, #tpu.memory_space<vmem>>, vector<1x300xf32>
    %28 = vector.broadcast %27 : vector<1x300xf32> to vector<8x300xf32>
    %29 = arith.addf %26, %28 : vector<8x300xf32>
    %cst_22 = arith.constant 0.000000e+00 : f32
    %30 = vector.broadcast %cst_22 : f32 to vector<8x300xf32>
    %31 = arith.maximumf %29, %30 : vector<8x300xf32>
    %c0_23 = arith.constant 0 : index
    %c0_24 = arith.constant 0 : index
    %32 = vector.load %arg10[%c0_23, %c0_24] : memref<2x300xf32, #tpu.memory_space<vmem>>, vector<2x300xf32>
    %33 = vector.extract_strided_slice %32 {offsets = [0, 0], sizes = [1, 300], strides = [1, 1]} : vector<2x300xf32> to vector<1x300xf32>
    %34 = vector.broadcast %33 : vector<1x300xf32> to vector<8x300xf32>
    %35 = arith.mulf %23, %34 : vector<8x300xf32>
    %cst_25 = arith.constant dense<0.000000e+00> : vector<8xf32>
    %36 = vector.multi_reduction <add>, %35, %cst_25 [1] : vector<8x300xf32> to vector<8xf32>
    %37 = vector.shape_cast %36 : vector<8xf32> to vector<8x1xf32>
    %c0_26 = arith.constant 0 : index
    %38 = memref.load %arg11[%c0_26] : memref<2xf32, #tpu.memory_space<smem>>
    %39 = vector.broadcast %38 : f32 to vector<8x1xf32>
    %40 = arith.addf %37, %39 : vector<8x1xf32>
    %41 = vector.extract_strided_slice %32 {offsets = [1, 0], sizes = [1, 300], strides = [1, 1]} : vector<2x300xf32> to vector<1x300xf32>
    %42 = vector.broadcast %41 : vector<1x300xf32> to vector<8x300xf32>
    %43 = arith.mulf %31, %42 : vector<8x300xf32>
    %cst_27 = arith.constant dense<0.000000e+00> : vector<8xf32>
    %44 = vector.multi_reduction <add>, %43, %cst_27 [1] : vector<8x300xf32> to vector<8xf32>
    %45 = vector.shape_cast %44 : vector<8xf32> to vector<8x1xf32>
    %c1 = arith.constant 1 : index
    %46 = memref.load %arg11[%c1] : memref<2xf32, #tpu.memory_space<smem>>
    %47 = vector.broadcast %46 : f32 to vector<8x1xf32>
    %48 = arith.addf %45, %47 : vector<8x1xf32>
    %c0_28 = arith.constant 0 : index
    %c0_29 = arith.constant 0 : index
    %49 = vector.load %arg12[%c0_28, %c0_29] : memref<8x2xf32, #tpu.memory_space<vmem>>, vector<8x1xf32>
    tpu.vector_store %arg12[%c0_28, %c0_29], %40 {strides = array<i32>} : memref<8x2xf32, #tpu.memory_space<vmem>>, vector<8x1xf32>,
    %c0_30 = arith.constant 0 : index
    %c1_31 = arith.constant 1 : index
    %50 = vector.load %arg12[%c0_30, %c1_31] : memref<8x2xf32, #tpu.memory_space<vmem>>, vector<8x1xf32>
    tpu.vector_store %arg12[%c0_30, %c1_31], %48 {strides = array<i32>} : memref<8x2xf32, #tpu.memory_space<vmem>>, vector<8x1xf32>,
    return
  }
  func.func @transform_0(%arg0: i32) -> (i32, i32) {
    %c0_i32 = arith.constant 0 : i32
    %c0_i32_0 = arith.constant 0 : i32
    return %arg0, %c0_i32 : i32, i32
  }
  func.func @transform_1(%arg0: i32) -> (i32, i32) {
    %c0_i32 = arith.constant 0 : i32
    %c0_i32_0 = arith.constant 0 : i32
    return %arg0, %c0_i32 : i32, i32
  }
  func.func @transform_2(%arg0: i32) -> (i32, i32) {
    %c0_i32 = arith.constant 0 : i32
    %c0_i32_0 = arith.constant 0 : i32
    %c0_i32_1 = arith.constant 0 : i32
    return %c0_i32, %c0_i32_0 : i32, i32
  }
  func.func @transform_3(%arg0: i32) -> (i32, i32) {
    %c0_i32 = arith.constant 0 : i32
    %c0_i32_0 = arith.constant 0 : i32
    %c0_i32_1 = arith.constant 0 : i32
    return %c0_i32, %c0_i32_0 : i32, i32
  }
  func.func @transform_4(%arg0: i32) -> (i32, i32) {
    %c0_i32 = arith.constant 0 : i32
    %c0_i32_0 = arith.constant 0 : i32
    %c0_i32_1 = arith.constant 0 : i32
    return %c0_i32, %c0_i32_0 : i32, i32
  }
  func.func @transform_5(%arg0: i32) -> (i32, i32) {
    %c0_i32 = arith.constant 0 : i32
    %c0_i32_0 = arith.constant 0 : i32
    %c0_i32_1 = arith.constant 0 : i32
    return %c0_i32, %c0_i32_0 : i32, i32
  }
  func.func @transform_6(%arg0: i32) -> (i32, i32) {
    %c0_i32 = arith.constant 0 : i32
    %c0_i32_0 = arith.constant 0 : i32
    %c0_i32_1 = arith.constant 0 : i32
    return %c0_i32, %c0_i32_0 : i32, i32
  }
  func.func @transform_7(%arg0: i32) -> (i32, i32) {
    %c0_i32 = arith.constant 0 : i32
    %c0_i32_0 = arith.constant 0 : i32
    %c0_i32_1 = arith.constant 0 : i32
    return %c0_i32, %c0_i32_0 : i32, i32
  }
  func.func @transform_8(%arg0: i32) -> (i32, i32) {
    %c0_i32 = arith.constant 0 : i32
    %c0_i32_0 = arith.constant 0 : i32
    %c0_i32_1 = arith.constant 0 : i32
    return %c0_i32, %c0_i32_0 : i32, i32
  }
  func.func @transform_9(%arg0: i32) -> (i32, i32) {
    %c0_i32 = arith.constant 0 : i32
    %c0_i32_0 = arith.constant 0 : i32
    %c0_i32_1 = arith.constant 0 : i32
    return %c0_i32, %c0_i32_0 : i32, i32
  }
  func.func @transform_10(%arg0: i32) -> i32 {
    %c0_i32 = arith.constant 0 : i32
    %c0_i32_0 = arith.constant 0 : i32
    return %c0_i32 : i32
  }
  func.func @transform_11(%arg0: i32) -> (i32, i32) {
    %c0_i32 = arith.constant 0 : i32
    %c0_i32_0 = arith.constant 0 : i32
    return %arg0, %c0_i32 : i32, i32
  }
}

</mosaic_0001>

<bundles_post_ra>
// kernel: critic_forward.1
= control target key start
LH: loop header
LB: loop body
LE: loop exit
PB: predicated region body
PF: predicated region fallthrough
CT: control target
= control target key end

     0   :  { %16 = vsyncpa [#allocation3], 0  ;;  %s3223_s0 = inlined_call_operand.hbm [shape: f32[8,16], index: 0, kind: input, shape index: {}]   ;;  %s3224_s1 = inlined_call_operand.hbm [shape: f32[8,8], index: 1, kind: input, shape index: {}]   ;;  %s3225_s2 = inlined_call_operand.hbm [shape: bf16[16,800], index: 2, kind: input, shape index: {}]   ;;  %s3226_s3 = inlined_call_operand.hbm [shape: bf16[8,800], index: 3, kind: input, shape index: {}]   ;;  %s3227_s4 = inlined_call_operand.hbm [shape: f32[1,800], index: 4, kind: input, shape index: {}]   ;;  %s3228_s5 = inlined_call_operand.hbm [shape: bf16[400,300], index: 5, kind: input, shape index: {}]   ;;  %s3229_s6 = inlined_call_operand.hbm [shape: f32[1,300], index: 6, kind: input, shape index: {}]   ;;  %s3230_s7 = inlined_call_operand.hbm [shape: bf16[400,300], index: 7, kind: input, shape index: {}]   ;;  %s3231_s8 = inlined_call_operand.hbm [shape: f32[1,300], index: 8, kind: input, shape index: {}]   ;;  %s3232_s9 = inlined_call_operand.vmem [shape: f32[2,300], index: 9, kind: input, shape index: {}]   ;;  %s3233_s10 = inlined_call_operand.hbm [shape: f32[2], index: 10, kind: input, shape index: {}]   ;;  %s3234_s11 = inlined_call_operand.vmem [shape: f32[8,2], index: 11, kind: output, shape index: {}]  }
   0x1   :  { %17 = vsyncpa [#allocation6], 0 }
   0x2   :  { %18 = vsyncpa [#allocation9], 0 }
   0x3   :  { %19 = vsyncpa [#allocation12], 0 }
   0x4   :  { %20 = vsyncpa [#allocation15], 0  ;;  %s38_s19 = sshll.u32 %s3224_s1, 4  ;;  %s39_s19 = int_to_ptr.hbm [resolvable:$true] %s38_s19 }
   0x5   :  { %21 = vsyncpa [#allocation4], 0  ;;  %s2976_s20 = smov [#allocation5]   ;;  %s62_s24 = sshll.u32 %s3226_s3, 4  ;;  %s63_s24 = int_to_ptr.hbm [resolvable:$true] %s62_s24 }
   0x6   :  { %s40_s21 = sshll.u32 %s2976_s20, 4  ;;  %s2977_s25 = smov [#allocation8]   ;;  %s41_s21 = int_to_ptr.vmem [resolvable:$true] %s40_s21 }
   0x7   :  { %43 = dma.hbm_to_vmem [thread:$0]  %s39_s19, 128, %s41_s21, [#allocation6]  }
   0x8   :  { %s64_s26 = sshll.u32 %s2977_s25, 4  ;;  %s83_s29 = sshll.u32 %s3228_s5, 4  ;;  %s65_s26 = int_to_ptr.vmem [resolvable:$true] %s64_s26  ;;  %s84_s29 = int_to_ptr.hbm [resolvable:$true] %s83_s29 }
   0x9   :  { %67 = dma.hbm_to_vmem [thread:$0]  %s63_s24, 448, %s65_s26, [#allocation9]  }
   0xa   :  { %s2978_s1 = smov [#allocation11]   ;;  %s107_s14 = sshll.u32 %s3230_s7, 4  ;;  %s108_s14 = int_to_ptr.hbm [resolvable:$true] %s107_s14 }
   0xb   :  { %s85_s30 = sshll.u32 %s2978_s1, 4  ;;  %s2979_s15 = smov 192   ;;  %s86_s30 = int_to_ptr.vmem [resolvable:$true] %s85_s30 }
   0xc   :  { %s2980_s3 = smov 12   ;;  %s2981_s16 = smov [#allocation14]  }
   0xd   :  { %91 = dma.hbm_to_vmem [thread:$0]  %s84_s29, 9600, %s86_s30, [#allocation12], %s2979_s15, %s2979_s15, %s2980_s3  }
   0xe   :  { %s109_s17 = sshll.u32 %s2981_s16, 4  ;;  %s27_s5 = sshll.u32 %s3223_s0, 4  ;;  %s110_s17 = int_to_ptr.vmem [resolvable:$true] %s109_s17  ;;  %s28_s5 = int_to_ptr.hbm [resolvable:$true] %s27_s5 }
   0xf   :  { %115 = dma.hbm_to_vmem [thread:$0]  %s108_s14, 9600, %s110_s17, [#allocation15], %s2979_s15, %s2979_s15, %s2980_s3  }
  0x10   :  { %s48_s22 = sshll.u32 %s3225_s2, 4  ;;  %s2982_s23 = smov [#allocation2]   ;;  %s49_s22 = int_to_ptr.hbm [resolvable:$true] %s48_s22 }
  0x11   :  { %s29_s24 = sshll.u32 %s2982_s23, 4  ;;  %s2983_s7 = smov [#allocation7]   ;;  %s30_s24 = int_to_ptr.vmem [resolvable:$true] %s29_s24 }
  0x12   :  { %32 = dma.hbm_to_vmem [thread:$0]  %s28_s5, 128, %s30_s24, [#allocation3]  }
  0x13   :  { %s50_s25 = sshll.u32 %s2983_s7, 4  ;;  %s2984_s26 = smov 448   ;;  %s51_s25 = int_to_ptr.vmem [resolvable:$true] %s50_s25 }
  0x14   :  { %s2985_s27 = smov 28   ;;  %s73_s29 = sshll.u32 %s3227_s4, 4  ;;  %s74_s29 = int_to_ptr.hbm [resolvable:$true] %s73_s29 }
  0x15   :  { %56 = dma.hbm_to_vmem [thread:$0]  %s49_s22, 896, %s51_s25, [#allocation6], %s2984_s26, %s2984_s26, %s2985_s27  }
  0x16   :  { %s2986_s1 = smov [#allocation10]   ;;  %s97_s13 = sshll.u32 %s3229_s6, 4  ;;  %s98_s13 = int_to_ptr.hbm [resolvable:$true] %s97_s13 }
  0x17   :  { %s75_s30 = sshll.u32 %s2986_s1, 4  ;;  %s2987_s14 = smov [#allocation13]   ;;  %s76_s30 = int_to_ptr.vmem [resolvable:$true] %s75_s30 }
  0x18   :  { %78 = dma.hbm_to_vmem [thread:$0]  %s74_s29, 112, %s76_s30, [#allocation9]  }
  0x19   :  { %s99_s15 = sshll.u32 %s2987_s14, 4  ;;  %s121_s17 = sshll.u32 %s3231_s8, 4  ;;  %s100_s15 = int_to_ptr.vmem [resolvable:$true] %s99_s15  ;;  %s122_s17 = int_to_ptr.hbm [resolvable:$true] %s121_s17 }
  0x1a   :  { %102 = dma.hbm_to_vmem [thread:$0]  %s98_s13, 48, %s100_s15, [#allocation12]  }
  0x1b   :  { %s134_s19 = sshll.u32 %s3233_s10, 4  ;;  %s2988_s5 = smov [#allocation16]   ;;  %s135_s19 = int_to_ptr.hbm [resolvable:$true] %s134_s19 }
  0x1c   :  { %s123_s20 = sshll.u32 %s2988_s5, 4  ;;  %s2989_s6 = smov [#allocation17]   ;;  %s124_s20 = int_to_ptr.vmem [resolvable:$true] %s123_s20 }
  0x1d   :  { %126 = dma.hbm_to_vmem [thread:$0]  %s122_s17, 48, %s124_s20, [#allocation15]  }
  0x1e   :  { %137 = dma.hbm_to_smem %s135_s19, 16, %s2989_s6, [#allocation4]  }
  0x1f   :  { %2964 = dma.done.wait [#allocation3], 128  }
  0x20   :  { %2965 = vsyncadd [#allocation3], 4294967168 }
  0x21   :  { %2966 = dma.done.wait [#allocation6], 1024  }
  0x22   :  { %2967 = vsyncadd [#allocation6], 4294966272 }
  0x23   :  { %2968 = dma.done.wait [#allocation9], 560  }
  0x24   :  { %2969 = vsyncadd [#allocation9], 4294966736 }
  0x25   :  { %2970 = dma.done.wait [#allocation12], 9648  }
  0x26   :  { %2971 = vsyncadd [#allocation12], 4294957648 }
  0x27   :  { %2972 = dma.done.wait [#allocation15], 9648  }
  0x28   :  { %2973 = vsyncadd [#allocation15], 4294957648 }
  0x29   :  { %2974 = dma.done.wait [#allocation4], 16  }
  0x2a   :  { %2975 = vsyncadd [#allocation4], 4294967280 }
  0x2b   :  { %178 = sfence }
  0x2c   :  { %v192_v0 = vld [vmem:[#allocation8] sm:$0xff]  ;;  %v193_v1 = vld [vmem:[#allocation8 + $0x8] sm:$0xff]  ;;  %v194_v7 = vld [vmem:[#allocation8 + $0x10] sm:$0xff]  ;;  %vm218_vm0 = vcmask 1043456   ;;  %vm214_vm1 = vcmask 64512   ;;  %vm367_vm2 = vcmask 130048  }
  0x2d   :  { %v200_v2 = vunpack.c.l.b16 %v192_v0  ;;  %v201_v3 = vunpack.c.h.b16 %v192_v0  ;;  %v202_v4 = vunpack.c.l.b16 %v193_v1  ;;  %v203_v5 = vunpack.c.h.b16 %v193_v1  ;;  %v182_v6 = vld [vmem:[#allocation5] sm:$0xff]  ;;  %v1924_v10 = vld [vmem:[#allocation7] sm:$0xf]  ;;  %v195_v11 = vld [vmem:[#allocation8 + $0x18] sm:$0xf]  ;;  %s2990_s8 = smov 112  }
  0x2e   :  { %v205_v8 = vunpack.c.h.b16 %v194_v7  ;;  %v204_v9 = vunpack.c.l.b16 %v194_v7  ;;  %v2567_v16 = vld [vmem:[#allocation7 + $0x18] sm:$0xf0]  ;;  %v1932_v17 = vld [vmem:[#allocation7 + $0x8] sm:$0xf]  ;;  %v2568_v18 = vld [vmem:[#allocation7 + $0x20] sm:$0xf0]  ;;  %v183_v19 = vpack.c.bf16 %v182_v6, %v182_v6  ;;  %v206_v22 = vunpack.c.l.b16 %v195_v11 }
  0x2f   :  { %v207_v12 = vpack.c.b16 %v200_v2, %v200_v2  ;;  %v208_v13 = vpack.c.b16 %v201_v3, %v201_v3  ;;  %v209_v14 = vpack.c.b16 %v202_v4, %v202_v4  ;;  %v210_v15 = vpack.c.b16 %v203_v5, %v203_v5  ;;  %v2564_v23 = vld [vmem:[#allocation7 + $0x4] sm:$0xf]  ;;  %v1926_v24 = vld [vmem:[#allocation7 + $0x1c] sm:$0xf0]  ;;  %v1940_v25 = vld [vmem:[#allocation7 + $0x10] sm:$0xf] }
  0x30   :  { %v212_v20 = vpack.c.b16 %v205_v8, %v205_v8  ;;  %v211_v21 = vpack.c.b16 %v204_v9, %v204_v9  ;;  %v2569_v30 = vld [vmem:[#allocation7 + $0x28] sm:$0xf0]  ;;  %v213_v33 = vpack.c.b16 %v206_v22, %v206_v22  ;;  %v1934_v35 = vld [vmem:[#allocation7 + $0x24] sm:$0xf0]  ;;  %v1925_v36 = vor.u32 %v2567_v16, %v1924_v10  ;;  %v180_v42 = vld [vmem:[#allocation2] sm:$0xff]  ;;  %s2563_s24 = sld [smem:[#allocation17 + $0x1]] }
  0x31   :  { %v220_v26 = vsel %vm218_vm0, %v207_v12, 0  ;;  %v223_v27 = vsel %vm218_vm0, %v208_v13, 0  ;;  %v226_v28 = vsel %vm218_vm0, %v209_v14, 0  ;;  %v229_v29 = vsel %vm218_vm0, %v210_v15, 0  ;;  %v2565_v34 = vld [vmem:[#allocation7 + $0xc] sm:$0xf] }
  0x32   :  { %247 = vmatpush.bf16.msra.mxu0 %v220_v26  ;;  %260 = vmatpush.bf16.msra.mxu1 %v223_v27  ;;  %v235_v31 = vsel %vm218_vm0, %v212_v20, 0  ;;  %v232_v32 = vsel %vm218_vm0, %v211_v21, 0  ;;  %v238_v37 = vsel %vm218_vm0, %v213_v33, 0  ;;  %v1933_v38 = vor.u32 %v2568_v18, %v1932_v17  ;;  %v1948_v43 = vld [vmem:[#allocation7 + $0x18] sm:$0xf] }
  0x33   :  { %273 = vmatpush.bf16.msra.mxu2 %v226_v28  ;;  %286 = vmatpush.bf16.msra.mxu3 %v229_v29  ;;  %v1929_v39 = vor.u32 %v2564_v23, %v1926_v24  ;;  %v1941_v40 = vor.u32 %v2569_v30, %v1940_v25  ;;  %v1937_v41 = vor.u32 %v2565_v34, %v1934_v35  ;;  %v2570_v44 = vld [vmem:[#allocation7 + $0x30] sm:$0xf0]  ;;  %v1942_v46 = vld [vmem:[#allocation7 + $0x2c] sm:$0xf0]  ;;  %v2043_v50 = vld [vmem:[#allocation11 + $0xa8] sm:$0xf] }
  0x34   :  { %v2566_v45 = vld [vmem:[#allocation7 + $0x14] sm:$0xf]  ;;  %v181_v47 = vpack.c.bf16 %v180_v42, %v180_v42  ;;  %v1949_v48 = vor.u32 %v2570_v44, %v1948_v43  ;;  %v2593_v51 = vld [vmem:[#allocation11 + $0xb0] sm:$0xf0]  ;;  %v2031_v52 = vld [vmem:[#allocation11 + $0x90] sm:$0xf] }
  0x35   :  { %1915 = vmatmul.msk.bf16.vlgmr.msra.gmra.mxu0 %vm214_vm1, %v183_v19  ;;  %1916 = vmatmul.msk.bf16.vlgmr.msra.gmra.mxu1 %vm214_vm1, %v183_v19  ;;  %v1945_v49 = vor.u32 %v2566_v45, %v1942_v46  ;;  %v2044_v53 = vor.u32 %v2593_v51, %v2043_v50  ;;  %v2590_v54 = vld [vmem:[#allocation11 + $0x98] sm:$0xf0]  ;;  %v2019_v56 = vld [vmem:[#allocation11 + $0x78] sm:$0xf]  ;;  %v2587_v57 = vld [vmem:[#allocation11 + $0x80] sm:$0xf0] }
  0x36   :  { %312 = vmatpush.bf16.msrb.mxu1 %v235_v31  ;;  %299 = vmatpush.bf16.msrb.mxu0 %v232_v32  ;;  %v2032_v55 = vor.u32 %v2590_v54, %v2031_v52  ;;  %v2139_v58 = vld [vmem:[#allocation11 + $0x168] sm:$0xf]  ;;  %v2617_v59 = vld [vmem:[#allocation11 + $0x170] sm:$0xf0]  ;;  %v2020_v61 = vor.u32 %v2587_v57, %v2019_v56  ;;  %v2007_v62 = vld [vmem:[#allocation11 + $0x60] sm:$0xf] }
  0x37   :  { %1917 = vmatmul.msk.bf16.vlgmr.msra.gmra.mxu2 %vm214_vm1, %v183_v19  ;;  %1918 = vmatmul.msk.bf16.vlgmr.msra.gmra.mxu3 %vm214_vm1, %v183_v19  ;;  %v2140_v60 = vor.u32 %v2617_v59, %v2139_v58  ;;  %v2584_v63 = vld [vmem:[#allocation11 + $0x68] sm:$0xf0]  ;;  %v1995_v1 = vld [vmem:[#allocation11 + $0x48] sm:$0xf]  ;;  %v2581_v2 = vld [vmem:[#allocation11 + $0x50] sm:$0xf0] }
  0x38   :  { %378 = vmatpush.bf16.msrb.mxu3 %v1925_v36  ;;  %325 = vmatpush.bf16.msrb.mxu2 %v238_v37  ;;  %v2008_v0 = vor.u32 %v2584_v63, %v2007_v62  ;;  %v1996_v3 = vor.u32 %v2581_v2, %v1995_v1  ;;  %v1983_v4 = vld [vmem:[#allocation11 + $0x30] sm:$0xf]  ;;  %v2578_v5 = vld [vmem:[#allocation11 + $0x38] sm:$0xf0]  ;;  %v1971_v7 = vld [vmem:[#allocation11 + $0x18] sm:$0xf] }
  0x39   :  { %v1984_v6 = vor.u32 %v2578_v5, %v1983_v4  ;;  %v2575_v8 = vld [vmem:[#allocation11 + $0x20] sm:$0xf0]  ;;  %v2127_v10 = vld [vmem:[#allocation11 + $0x150] sm:$0xf]  ;;  %v2614_v11 = vld [vmem:[#allocation11 + $0x158] sm:$0xf0] }
  0x3a   :  { %404 = vmatpush.bf16.msra.mxu1 %v1933_v38  ;;  %391 = vmatpush.bf16.msra.mxu0 %v1929_v39  ;;  %v1972_v9 = vor.u32 %v2575_v8, %v1971_v7  ;;  %v2128_v12 = vor.u32 %v2614_v11, %v2127_v10  ;;  %v1959_v13 = vld [vmem:[#allocation11] sm:$0xf]  ;;  %v2572_v14 = vld [vmem:[#allocation11 + $0x8] sm:$0xf0]  ;;  %v2141_v17 = vld [vmem:[#allocation11 + $0x174] sm:$0xf0] }
  0x3b   :  { %v2616_v15 = vld [vmem:[#allocation11 + $0x16c] sm:$0xf]  ;;  %v1960_v16 = vor.u32 %v2572_v14, %v1959_v13  ;;  %v2115_v18 = vld [vmem:[#allocation11 + $0x138] sm:$0xf]  ;;  %v2613_v22 = vld [vmem:[#allocation11 + $0x154] sm:$0xf] }
  0x3c   :  { %430 = vmatpush.bf16.msra.mxu3 %v1941_v40  ;;  %417 = vmatpush.bf16.msra.mxu2 %v1937_v41  ;;  %v2144_v20 = vor.u32 %v2616_v15, %v2141_v17  ;;  %v2129_v23 = vld [vmem:[#allocation11 + $0x15c] sm:$0xf0]  ;;  %v2608_v26 = vld [vmem:[#allocation11 + $0x128] sm:$0xf0]  ;;  %v2235_v28 = vld [vmem:[#allocation11 + $0x228] sm:$0xf] }
  0x3d   :  { %v2132_v24 = vor.u32 %v2613_v22, %v2129_v23  ;;  %v2103_v25 = vld [vmem:[#allocation11 + $0x120] sm:$0xf]  ;;  %v2641_v29 = vld [vmem:[#allocation11 + $0x230] sm:$0xf0]  ;;  %v2610_v30 = vld [vmem:[#allocation11 + $0x13c] sm:$0xf] }
  0x3e   :  { %v2104_v27 = vor.u32 %v2608_v26, %v2103_v25  ;;  %v2236_v31 = vor.u32 %v2641_v29, %v2235_v28  ;;  %v2117_v32 = vld [vmem:[#allocation11 + $0x144] sm:$0xf0]  ;;  %v2605_v34 = vld [vmem:[#allocation11 + $0x110] sm:$0xf0]  ;;  %v2223_v37 = vld [vmem:[#allocation11 + $0x210] sm:$0xf] }
  0x3f   :  { %v2091_v33 = vld [vmem:[#allocation11 + $0x108] sm:$0xf]  ;;  %v2120_v35 = vor.u32 %v2610_v30, %v2117_v32  ;;  %v2638_v38 = vld [vmem:[#allocation11 + $0x218] sm:$0xf0]  ;;  %v2607_v40 = vld [vmem:[#allocation11 + $0x124] sm:$0xf] }
  0x40   :  { %v2092_v36 = vor.u32 %v2605_v34, %v2091_v33  ;;  %v2224_v39 = vor.u32 %v2638_v38, %v2223_v37  ;;  %v2105_v41 = vld [vmem:[#allocation11 + $0x12c] sm:$0xf0]  ;;  %v2602_v44 = vld [vmem:[#allocation11 + $0xf8] sm:$0xf0]  ;;  %v2211_v46 = vld [vmem:[#allocation11 + $0x1f8] sm:$0xf] }
  0x41   :  { %v2108_v42 = vor.u32 %v2607_v40, %v2105_v41  ;;  %v2079_v43 = vld [vmem:[#allocation11 + $0xf0] sm:$0xf]  ;;  %v2644_v50 = vld [vmem:[#allocation11 + $0x248] sm:$0xf0]  ;;  %v2045_v52 = vld [vmem:[#allocation11 + $0xb4] sm:$0xf0] }
  0x42   :  { %v2080_v45 = vor.u32 %v2602_v44, %v2079_v43  ;;  %v2592_v51 = vld [vmem:[#allocation11 + $0xac] sm:$0xf]  ;;  %v2093_v56 = vld [vmem:[#allocation11 + $0x114] sm:$0xf0]  ;;  %v2599_v59 = vld [vmem:[#allocation11 + $0xe0] sm:$0xf0] }
  0x43   :  { %v2048_v54 = vor.u32 %v2592_v51, %v2045_v52  ;;  %v2067_v57 = vld [vmem:[#allocation11 + $0xd8] sm:$0xf]  ;;  %v2632_v62 = vld [vmem:[#allocation11 + $0x1e8] sm:$0xf0]  ;;  %v2033_v1 = vld [vmem:[#allocation11 + $0x9c] sm:$0xf0] }
  0x44   :  { %v2601_v2 = vld [vmem:[#allocation11 + $0xf4] sm:$0xf]  ;;  %v2081_v4 = vld [vmem:[#allocation11 + $0xfc] sm:$0xf0]  ;;  %v2596_v7 = vld [vmem:[#allocation11 + $0xc8] sm:$0xf0] }
  0x45   :  { %1919 = vmatmul.msk.bf16.vlgmr.msrb.gmra.mxu0 %vm214_vm1, %v183_v19  ;;  %1920 = vmatmul.msk.bf16.vlgmr.msrb.gmra.mxu1 %vm214_vm1, %v183_v19  ;;  %v2084_v5 = vor.u32 %v2601_v2, %v2081_v4  ;;  %v2629_v10 = vld [vmem:[#allocation11 + $0x1d0] sm:$0xf0]  ;;  %v2237_v13 = vld [vmem:[#allocation11 + $0x234] sm:$0xf0]  ;;  %v2586_v14 = vld [vmem:[#allocation11 + $0x7c] sm:$0xf] }
  0x46   :  { %456 = vmatpush.bf16.msrb.mxu1 %v1949_v48  ;;  %443 = vmatpush.bf16.msrb.mxu0 %v1945_v49  ;;  %v2247_v48 = vld [vmem:[#allocation11 + $0x240] sm:$0xf]  ;;  %v2598_v17 = vld [vmem:[#allocation11 + $0xdc] sm:$0xf]  ;;  %v2637_v23 = vld [vmem:[#allocation11 + $0x214] sm:$0xf] }
  0x47   :  { %1921 = vmatmul.msk.bf16.vlgmr.msrb.gmra.mxu2 %vm214_vm1, %v183_v19  ;;  %1950 = vmatmul.msk.bf16.vlgmr.msrb.gmra.mxu3 %vm367_vm2, %v181_v47  ;;  %v2611_v19 = vld [vmem:[#allocation11 + $0x140] sm:$0xf0]  ;;  %v2626_v22 = vld [vmem:[#allocation11 + $0x1b8] sm:$0xf0]  ;;  %v2225_v25 = vld [vmem:[#allocation11 + $0x21c] sm:$0xf0] }
  0x48   :  { %1007 = vmatpush.bf16.msrb.mxu2 %v2044_v53  ;;  %1020 = vmatpush.bf16.msrb.mxu3 %v2140_v60  ;;  %v2116_v21 = vor.u32 %v2611_v19, %v2115_v18  ;;  %v2248_v53 = vor.u32 %v2644_v50, %v2247_v48  ;;  %v2068_v60 = vor.u32 %v2599_v59, %v2067_v57  ;;  %v2069_v18 = vld [vmem:[#allocation11 + $0xe4] sm:$0xf0]  ;;  %v2583_v26 = vld [vmem:[#allocation11 + $0x64] sm:$0xf]  ;;  %v2634_v37 = vld [vmem:[#allocation11 + $0x1fc] sm:$0xf] }
  0x49   :  { %v2228_v28 = vor.u32 %v2637_v23, %v2225_v25  ;;  %v2595_v30 = vld [vmem:[#allocation11 + $0xc4] sm:$0xf]  ;;  %v2580_v40 = vld [vmem:[#allocation11 + $0x4c] sm:$0xf]  ;;  %v2151_v44 = vld [vmem:[#allocation11 + $0x180] sm:$0xf] }
  0x4a   :  { %v2201_v48 = vld [vmem:[#allocation11 + $0x1ec] sm:$0xf0]  ;;  %v1985_v50 = vld [vmem:[#allocation11 + $0x3c] sm:$0xf0]  ;;  %v2625_v2 = vld [vmem:[#allocation11 + $0x1b4] sm:$0xf] }
  0x4b   :  { %vm1289_vm3 = vcmask 916480   ;;  %vm1873_vm4 = vcmask 359424   ;;  %vm1901_vm5 = vcmask 7168   ;;  %vm1903_vm6 = vcmask 15368  }
  0x4c   :  { %1008 = vmatpush.bf16.msrb.mxu2 %v2032_v55  ;;  %1021 = vmatpush.bf16.msrb.mxu3 %v2128_v12  ;;  %v2604_v55 = vld [vmem:[#allocation11 + $0x10c] sm:$0xf] }
  0x4d   :  { %v2096_v58 = vor.u32 %v2604_v55, %v2093_v56  ;;  %v2640_v12 = vld [vmem:[#allocation11 + $0x22c] sm:$0xf]  ;;  %v2643_v55 = vld [vmem:[#allocation11 + $0x244] sm:$0xf]  ;;  %v2249_v56 = vld [vmem:[#allocation11 + $0x24c] sm:$0xf0] }
  0x4e   :  { %v2240_v15 = vor.u32 %v2640_v12, %v2237_v13  ;;  %v2252_v59 = vor.u32 %v2643_v55, %v2249_v56  ;;  %v2622_v12 = vld [vmem:[#allocation11 + $0x19c] sm:$0xf]  ;;  %v2165_v13 = vld [vmem:[#allocation11 + $0x1a4] sm:$0xf0] }
  0x4f   :  { %v2207_v55 = vld [vmem:[#allocation11 + $0x1e8] sm:$0xf] }
  0x50   :  { %1009 = vmatpush.bf16.msrb.mxu2 %v2020_v61  ;;  %1022 = vmatpush.bf16.msrb.mxu3 %v2116_v21  ;;  %v2199_v61 = vld [vmem:[#allocation11 + $0x1e0] sm:$0xf]  ;;  %v2175_v21 = vld [vmem:[#allocation11 + $0x1b0] sm:$0xf] }
  0x51   :  { %v2200_v63 = vor.u32 %v2632_v62, %v2199_v61  ;;  %v2189_v61 = vld [vmem:[#allocation11 + $0x1d4] sm:$0xf0] }
  0x54   :  { %1010 = vmatpush.bf16.msrb.mxu2 %v2008_v0  ;;  %1023 = vmatpush.bf16.msrb.mxu3 %v2104_v27  ;;  %v2589_v0 = vld [vmem:[#allocation11 + $0x94] sm:$0xf]  ;;  %v2009_v27 = vld [vmem:[#allocation11 + $0x6c] sm:$0xf0] }
  0x55   :  { %1951 = vmatmul.msk.bf16.vlgmr.msra.gmra.mxu0 %vm367_vm2, %v181_v47  ;;  %1952 = vmatmul.msk.bf16.vlgmr.msra.gmra.mxu1 %vm367_vm2, %v181_v47  ;;  %v2012_v29 = vor.u32 %v2583_v26, %v2009_v27  ;;  %v2243_v26 = vld [vmem:[#allocation11 + $0x230] sm:$0xf]  ;;  %v2642_v27 = vld [vmem:[#allocation11 + $0x238] sm:$0xf0] }
  0x56   :  { %1033 = vmatpush.bf16.msra.mxu0 %v2236_v31  ;;  %1053 = vmatpush.bf16.msra.mxu1 %v2248_v53  ;;  %v2057_v31 = vld [vmem:[#allocation11 + $0xcc] sm:$0xf0] }
  0x57   :  { %1953 = vmatmul.msk.bf16.vlgmr.msra.gmra.mxu2 %vm367_vm2, %v181_v47  ;;  %1954 = vmatmul.msk.bf16.vlgmr.msra.gmra.mxu3 %vm367_vm2, %v181_v47  ;;  %v2060_v32 = vor.u32 %v2595_v30, %v2057_v31  ;;  %v2231_v31 = vld [vmem:[#allocation11 + $0x218] sm:$0xf] }
  0x58   :  { %1011 = vmatpush.bf16.msrb.mxu2 %v1996_v3  ;;  %1024 = vmatpush.bf16.msrb.mxu3 %v2092_v36  ;;  %v2036_v3 = vor.u32 %v2589_v0, %v2033_v1  ;;  %v2623_v36 = vld [vmem:[#allocation11 + $0x1a0] sm:$0xf0]  ;;  %v1973_v0 = vld [vmem:[#allocation11 + $0x24] sm:$0xf0] }
  0x5a   :  { %1034 = vmatpush.bf16.msra.mxu0 %v2224_v39  ;;  %v2213_v39 = vld [vmem:[#allocation11 + $0x204] sm:$0xf0] }
  0x5b   :  { %v2216_v41 = vor.u32 %v2634_v37, %v2213_v39 }
  0x5c   :  { %1012 = vmatpush.bf16.msrb.mxu2 %v1984_v6  ;;  %1025 = vmatpush.bf16.msrb.mxu3 %v2080_v45  ;;  %v2055_v6 = vld [vmem:[#allocation11 + $0xc0] sm:$0xf]  ;;  %v2620_v45 = vld [vmem:[#allocation11 + $0x188] sm:$0xf0] }
  0x5d   :  { %v2056_v8 = vor.u32 %v2596_v7, %v2055_v6  ;;  %v1961_v6 = vld [vmem:[#allocation11 + $0xc] sm:$0xf0] }
  0x60   :  { %1013 = vmatpush.bf16.msrb.mxu2 %v1972_v9  ;;  %1026 = vmatpush.bf16.msrb.mxu3 %v2068_v60  ;;  %v2187_v9 = vld [vmem:[#allocation11 + $0x1c8] sm:$0xf]  ;;  %v2628_v60 = vld [vmem:[#allocation11 + $0x1cc] sm:$0xf] }
  0x61   :  { %v2188_v11 = vor.u32 %v2629_v10, %v2187_v9  ;;  %v2192_v62 = vor.u32 %v2628_v60, %v2189_v61 }
  0x64   :  { %1014 = vmatpush.bf16.msrb.mxu2 %v1960_v16  ;;  %1027 = vmatpush.bf16.msrb.mxu3 %v2056_v8  ;;  %v2021_v16 = vld [vmem:[#allocation11 + $0x84] sm:$0xf0] }
  0x65   :  { %1955 = vmatmul.msk.bf16.vlgmr.msrb.gmra.mxu0 %vm367_vm2, %v181_v47  ;;  %1956 = vmatmul.msk.bf16.vlgmr.msrb.gmra.mxu1 %vm367_vm2, %v181_v47  ;;  %v2635_v47 = vld [vmem:[#allocation11 + $0x200] sm:$0xf0]  ;;  %v2024_v19 = vor.u32 %v2586_v14, %v2021_v16  ;;  %v2168_v14 = vor.u32 %v2622_v12, %v2165_v13  ;;  %v2618_v12 = vld [vmem:[#allocation11 + $0x178] sm:$0xf0] }
  0x66   :  { %v2212_v49 = vor.u32 %v2635_v47, %v2211_v46  ;;  %1059 = vmatpush.bf16.msrb.mxu1 %v2048_v54  ;;  %v2631_v46 = vld [vmem:[#allocation11 + $0x1e4] sm:$0xf]  ;;  %v2152_v47 = vor.u32 %v2620_v45, %v2151_v44  ;;  %v2636_v44 = vld [vmem:[#allocation11 + $0x208] sm:$0xf0] }
  0x67   :  { %v2204_v51 = vor.u32 %v2631_v46, %v2201_v48  ;;  %v2619_v16 = vld [vmem:[#allocation11 + $0x184] sm:$0xf]  ;;  %v2051_v48 = vld [vmem:[#allocation11 + $0xb0] sm:$0xf] }
  0x68   :  { %1072 = vmatpush.bf16.msra.mxu2 %v2144_v20  ;;  %1035 = vmatpush.bf16.msra.mxu0 %v2212_v49  ;;  %v2072_v20 = vor.u32 %v2598_v17, %v2069_v18  ;;  %v2577_v49 = vld [vmem:[#allocation11 + $0x34] sm:$0xf]  ;;  %v2153_v17 = vld [vmem:[#allocation11 + $0x18c] sm:$0xf0] }
  0x69   :  { %1085 = vmatpush.bf16.msra.mxu3 %v2240_v15  ;;  %v1988_v52 = vor.u32 %v2577_v49, %v1985_v50  ;;  %v3110_v15 = vld [vmem:[#allocation10] sm:$0x7f] }
  0x6a   :  { %1060 = vmatpush.bf16.msrb.mxu1 %v2036_v3  ;;  %v2177_v3 = vld [vmem:[#allocation11 + $0x1bc] sm:$0xf0]  ;;  %v464_v18 = vperm.slane %v3110_v15, 0  ;;  %v465_v37 = vperm.slane %v3110_v15, 1  ;;  %v2594_v49 = vld [vmem:[#allocation11 + $0xb8] sm:$0xf0] }
  0x6b   :  { %v2180_v4 = vor.u32 %v2625_v2, %v2177_v3  ;;  %v468_v56 = vperm.slane %v3110_v15, 4 }
  0x6c   :  { %1073 = vmatpush.bf16.msra.mxu2 %v2132_v24  ;;  %1036 = vmatpush.bf16.msra.mxu0 %v2200_v63  ;;  %v2176_v24 = vor.u32 %v2626_v22, %v2175_v21  ;;  %v2574_v63 = vld [vmem:[#allocation11 + $0x1c] sm:$0xf] }
  0x6d   :  { %1086 = vmatpush.bf16.msra.mxu3 %v2228_v28  ;;  %v1976_v1 = vor.u32 %v2574_v63, %v1973_v0 }
  0x6e   :  { %1061 = vmatpush.bf16.msrb.mxu1 %v2024_v19  ;;  %v2156_v19 = vor.u32 %v2619_v16, %v2153_v17  ;;  %v2027_v17 = vld [vmem:[#allocation11 + $0x80] sm:$0xf] }
  0x70   :  { %1074 = vmatpush.bf16.msra.mxu2 %v2120_v35  ;;  %1037 = vmatpush.bf16.msra.mxu0 %v2188_v11  ;;  %v2163_v35 = vld [vmem:[#allocation11 + $0x198] sm:$0xf] }
  0x71   :  { %v2164_v38 = vor.u32 %v2623_v36, %v2163_v35  ;;  %1087 = vmatpush.bf16.msra.mxu3 %v2216_v41 }
  0x72   :  { %1062 = vmatpush.bf16.msrb.mxu1 %v2012_v29  ;;  %v2244_v29 = vor.u32 %v2642_v27, %v2243_v26  ;;  %v469_v26 = vperm.slane %v3110_v15, 5 }
  0x74   :  { %1075 = vmatpush.bf16.msra.mxu2 %v2108_v42  ;;  %1038 = vmatpush.bf16.msra.mxu0 %v2176_v24  ;;  %v1997_v42 = vld [vmem:[#allocation11 + $0x54] sm:$0xf0] }
  0x75   :  { %v2000_v43 = vor.u32 %v2580_v40, %v1997_v42  ;;  %1088 = vmatpush.bf16.msra.mxu3 %v2204_v51 }
  0x77   :  { %1063 = vmatpush.bf16.msrb.mxu1 %v2000_v43  ;;  %v2219_v43 = vld [vmem:[#allocation11 + $0x200] sm:$0xf] }
  0x78   :  { %1076 = vmatpush.bf16.msra.mxu2 %v2096_v58  ;;  %1039 = vmatpush.bf16.msra.mxu0 %v2164_v38  ;;  %v466_v38 = vperm.slane %v3110_v15, 2 }
  0x79   :  { %1089 = vmatpush.bf16.msra.mxu3 %v2192_v62  ;;  %v2052_v62 = vor.u32 %v2594_v49, %v2051_v48  ;;  %v2003_v49 = vld [vmem:[#allocation11 + $0x50] sm:$0xf] }
  0x7b   :  { %1064 = vmatpush.bf16.msrb.mxu1 %v1988_v52  ;;  %v467_v52 = vperm.slane %v3110_v15, 3 }
  0x7c   :  { %1077 = vmatpush.bf16.msra.mxu2 %v2084_v5  ;;  %1040 = vmatpush.bf16.msra.mxu0 %v2152_v47  ;;  %v2571_v5 = vld [vmem:[#allocation11 + $0x4] sm:$0xf]  ;;  %v2220_v47 = vor.u32 %v2636_v44, %v2219_v43  ;;  %v2612_v43 = vld [vmem:[#allocation11 + $0x148] sm:$0xf0] }
  0x7d   :  { %v1964_v7 = vor.u32 %v2571_v5, %v1961_v6  ;;  %1090 = vmatpush.bf16.msra.mxu3 %v2180_v4  ;;  %v2039_v4 = vld [vmem:[#allocation11 + $0x98] sm:$0xf]  ;;  %v2591_v5 = vld [vmem:[#allocation11 + $0xa0] sm:$0xf0] }
  0x7e   :  { %v2040_v13 = vor.u32 %v2591_v5, %v2039_v4  ;;  %v2719_v4 = vld [vmem:[#allocation14 + $0x248] sm:$0xf0] }
  0x7f   :  { %1065 = vmatpush.bf16.msrb.mxu1 %v1976_v1 }
  0x80   :  { %1078 = vmatpush.bf16.msra.mxu2 %v2072_v20  ;;  %1105 = vmatpush.bf16.msrb.mxu0 %v2252_v59 }
  0x81   :  { %1091 = vmatpush.bf16.msra.mxu3 %v2168_v14  ;;  %v2195_v14 = vld [vmem:[#allocation11 + $0x1d0] sm:$0xf] }
  0x83   :  { %1066 = vmatpush.bf16.msrb.mxu1 %v1964_v7 }
  0x84   :  { %1079 = vmatpush.bf16.msra.mxu2 %v2060_v32  ;;  %v2639_v32 = vld [vmem:[#allocation11 + $0x220] sm:$0xf0] }
  0x85   :  { %1092 = vmatpush.bf16.msra.mxu3 %v2156_v19  ;;  %v2232_v42 = vor.u32 %v2639_v32, %v2231_v31  ;;  %v2627_v31 = vld [vmem:[#allocation11 + $0x1c0] sm:$0xf0] }
  0xb2   :  { %v3102_v33 = vpop.f32.mrf.mxu0  ;;  %v3104_v34 = vpop.f32.mrf.mxu1 }
  0xba   :  { %v275_v53 = vpop.f32.mrf.mxu2  ;;  %v3106_v54 = vpop.f32.mrf.mxu3 }
  0xbb   :  { %v251_v57 = vpop.f32.mrf.mxu0  ;;  %v264_v58 = vpop.f32.mrf.mxu1 }
  0xbc   :  { %v2633_v57 = vld [vmem:[#allocation11 + $0x1f0] sm:$0xf0] }
  0xbd   :  { %v2208_v6 = vor.u32 %v2633_v57, %v2207_v55  ;;  %v2346_v55 = vld [vmem:[#allocation14 + $0xa8] sm:$0xf]  ;;  %v2111_v57 = vld [vmem:[#allocation11 + $0x128] sm:$0xf] }
  0xc2   :  { %v277_v8 = vpop.f32.mrf.mxu2  ;;  %v290_v9 = vpop.f32.mrf.mxu3 }
  0xc3   :  { %v301_v10 = vpop.f32.mrf.mxu0  ;;  %v3108_v11 = vpop.f32.mrf.mxu1  ;;  %v2147_v9 = vld [vmem:[#allocation11 + $0x170] sm:$0xf] }
  0xc4   :  { %v2148_v19 = vor.u32 %v2618_v12, %v2147_v9  ;;  %v2099_v9 = vld [vmem:[#allocation11 + $0x110] sm:$0xf]  ;;  %v2606_v12 = vld [vmem:[#allocation11 + $0x118] sm:$0xf0] }
  0xca   :  { %v3113_v20 = vpop.f32.mrf.mxu2  ;;  %v380_v21 = vpop.f32.mrf.mxu3 }
  0xcb   :  { %v381_v22 = vadd.f32 %v380_v21, %v3102_v33  ;;  %v303_v23 = vpop.f32.mrf.mxu0  ;;  %v316_v24 = vpop.f32.mrf.mxu1 }
  0xcc   :  { %v2135_v24 = vld [vmem:[#allocation11 + $0x158] sm:$0xf] }
  0xcd   :  { %v478_v25 = vadd.f32 %v464_v18, %v381_v22  ;;  %v2588_v18 = vld [vmem:[#allocation11 + $0x88] sm:$0xf0] }
  0xcf   :  { %v485_v28 = vmax.f32 %v478_v25, 0.0  ;;  %v2615_v25 = vld [vmem:[#allocation11 + $0x160] sm:$0xf0] }
  0xd1   :  { %v3116_v30 = vpack.c.bf16 %v485_v28, %v485_v28  ;;  %v2028_v28 = vor.u32 %v2588_v18, %v2027_v17  ;;  %v2348_v17 = vld [vmem:[#allocation14 + $0xb4] sm:$0xf0]  ;;  %v2100_v18 = vor.u32 %v2606_v12, %v2099_v9  ;;  %v2406_v12 = vld [vmem:[#allocation14 + $0x120] sm:$0xf] }
  0xd2   :  { %v329_v35 = vpop.f32.mrf.mxu2  ;;  %v382_v36 = vpop.f32.mrf.mxu3  ;;  %v2300_v9 = vld [vmem:[#allocation14 + $0x54] sm:$0xf0] }
  0xd3   :  { %1015 = vmatmul.bf16.vlgmr.msrb.gmra.mxu2 %v3116_v30  ;;  %v393_v33 = vpop.f32.mrf.mxu0  ;;  %v406_v39 = vpop.f32.mrf.mxu1  ;;  %v470_v35 = vperm.slane %v3110_v15, 6 }
  0xd4   :  { %v394_v40 = vadd.f32 %v393_v33, %v3104_v34  ;;  %v407_v41 = vadd.f32 %v406_v39, %v275_v53  ;;  %1137 = vmatpush.bf16.msrb.mxu2 %v2244_v29  ;;  %v2255_v34 = vld [vmem:[#allocation11 + $0x248] sm:$0xf]  ;;  %v2645_v53 = vld [vmem:[#allocation11 + $0x250] sm:$0xf0]  ;;  %v2183_v29 = vld [vmem:[#allocation11 + $0x1b8] sm:$0xf] }
  0xd5   :  { %v2256_v63 = vor.u32 %v2645_v53, %v2255_v34  ;;  %v2585_v33 = vld [vmem:[#allocation11 + $0x70] sm:$0xf0]  ;;  %v2184_v15 = vor.u32 %v2627_v31, %v2183_v29  ;;  %v2664_v31 = vld [vmem:[#allocation14 + $0x94] sm:$0xf] }
  0xd6   :  { %v479_v45 = vadd.f32 %v465_v37, %v394_v40  ;;  %v480_v46 = vadd.f32 %v466_v38, %v407_v41  ;;  %v2015_v38 = vld [vmem:[#allocation11 + $0x68] sm:$0xf]  ;;  %v2136_v41 = vor.u32 %v2615_v25, %v2135_v24  ;;  %v2609_v34 = vld [vmem:[#allocation11 + $0x130] sm:$0xf0]  ;;  %v2603_v24 = vld [vmem:[#allocation11 + $0x100] sm:$0xf0] }
  0xd7   :  { %v2112_v5 = vor.u32 %v2609_v34, %v2111_v57 }
  0xd8   :  { %v486_v50 = vmax.f32 %v479_v45, 0.0  ;;  %v487_v51 = vmax.f32 %v480_v46, 0.0  ;;  %1138 = vmatpush.bf16.msrb.mxu2 %v2232_v42  ;;  %v2123_v42 = vld [vmem:[#allocation11 + $0x140] sm:$0xf]  ;;  %v2016_v45 = vor.u32 %v2585_v33, %v2015_v38  ;;  %v2600_v33 = vld [vmem:[#allocation11 + $0xe8] sm:$0xf0] }
  0xd9   :  { %v2171_v46 = vld [vmem:[#allocation11 + $0x1a0] sm:$0xf] }
  0xda   :  { %v3124_v58 = vpack.c.bf16 %v486_v50, %v486_v50  ;;  %v3126_v59 = vpack.c.bf16 %v487_v51, %v487_v51  ;;  %v419_v60 = vpop.f32.mrf.mxu2  ;;  %v432_v61 = vpop.f32.mrf.mxu3  ;;  %v2582_v50 = vld [vmem:[#allocation11 + $0x58] sm:$0xf0]  ;;  %v2075_v38 = vld [vmem:[#allocation11 + $0xe0] sm:$0xf] }
  0xdb   :  { %v420_v0 = vadd.f32 %v419_v60, %v3106_v54  ;;  %v433_v1 = vadd.f32 %v432_v61, %v301_v10  ;;  %v395_v2 = vpop.f32.mrf.mxu0  ;;  %v408_v3 = vpop.f32.mrf.mxu1  ;;  %v2630_v54 = vld [vmem:[#allocation11 + $0x1d8] sm:$0xf0]  ;;  %v2159_v61 = vld [vmem:[#allocation11 + $0x188] sm:$0xf] }
  0xdc   :  { %1139 = vmatpush.bf16.msrb.mxu2 %v2220_v47  ;;  %1028 = vmatmul.bf16.vlgmr.msrb.gmra.mxu3 %v3124_v58  ;;  %v2196_v23 = vor.u32 %v2630_v54, %v2195_v14  ;;  %v2624_v47 = vld [vmem:[#allocation11 + $0x1a8] sm:$0xf0]  ;;  %v2550_v3 = vld [vmem:[#allocation14 + $0x240] sm:$0xf]  ;;  %v2665_v14 = vld [vmem:[#allocation14 + $0x98] sm:$0xf0] }
  0xdd   :  { %v481_v7 = vadd.f32 %v467_v52, %v420_v0  ;;  %1041 = vmatmul.bf16.vlgmr.msra.gmra.mxu0 %v3126_v59  ;;  %v482_v8 = vadd.f32 %v468_v56, %v433_v1  ;;  %1157 = vmatpush.bf16.msrb.mxu3 %v2256_v63  ;;  %v2124_v52 = vor.u32 %v2612_v43, %v2123_v42  ;;  %v2310_v43 = vld [vmem:[#allocation14 + $0x60] sm:$0xf] }
  0xde   :  { %1111 = vmatpush.bf16.msra.mxu0 %v2052_v62  ;;  %v2172_v56 = vor.u32 %v2624_v47, %v2171_v46  ;;  %v2621_v62 = vld [vmem:[#allocation11 + $0x190] sm:$0xf0]  ;;  %v2004_v1 = vor.u32 %v2582_v50, %v2003_v49  ;;  %v2551_v54 = vor.u32 %v2719_v4, %v2550_v3  ;;  %v2661_v47 = vld [vmem:[#allocation14 + $0x7c] sm:$0xf]  ;;  %v2430_v50 = vld [vmem:[#allocation14 + $0x150] sm:$0xf] }
  0xdf   :  { %v488_v10 = vmax.f32 %v481_v7, 0.0  ;;  %v489_v16 = vmax.f32 %v482_v8, 0.0  ;;  %v2579_v7 = vld [vmem:[#allocation11 + $0x40] sm:$0xf0]  ;;  %v2160_v8 = vor.u32 %v2621_v62, %v2159_v61  ;;  %v2597_v49 = vld [vmem:[#allocation11 + $0xd0] sm:$0xf0] }
  0xe0   :  { %1140 = vmatpush.bf16.msrb.mxu2 %v2208_v6  ;;  %v1991_v6 = vld [vmem:[#allocation11 + $0x38] sm:$0xf]  ;;  %v2312_v61 = vld [vmem:[#allocation14 + $0x6c] sm:$0xf0]  ;;  %v2418_v62 = vld [vmem:[#allocation14 + $0x138] sm:$0xf] }
  0xe1   :  { %v3131_v21 = vpack.c.bf16 %v488_v10, %v488_v10  ;;  %v1166_v22 = vpack.c.bf16 %v489_v16, %v489_v16  ;;  %v1992_v10 = vor.u32 %v2579_v7, %v1991_v6  ;;  %v2667_v16 = vld [vmem:[#allocation14 + $0xac] sm:$0xf]  ;;  %v2713_v3 = vld [vmem:[#allocation14 + $0x218] sm:$0xf0]  ;;  %v2286_v4 = vld [vmem:[#allocation14 + $0x30] sm:$0xf] }
  0xe2   :  { %1112 = vmatpush.bf16.msra.mxu0 %v2040_v13  ;;  %v434_v27 = vpop.f32.mrf.mxu3  ;;  %v421_v32 = vpop.f32.mrf.mxu2  ;;  %v2334_v13 = vld [vmem:[#allocation14 + $0x90] sm:$0xf] }
  0xe3   :  { %2257 = vmatmul.msk.bf16.vlgmr.msra.gmra.mxu1 %vm367_vm2, %v3131_v21  ;;  %1283 = vrot.lane.b32.xlu1 %v1166_v22, %s2990_s8  ;;  %v445_v36 = vpop.f32.mrf.mxu0  ;;  %v458_v37 = vpop.f32.mrf.mxu1  ;;  %v2576_v22 = vld [vmem:[#allocation11 + $0x28] sm:$0xf0]  ;;  %v2335_v25 = vor.u32 %v2665_v14, %v2334_v13  ;;  %v2662_v27 = vld [vmem:[#allocation14 + $0x80] sm:$0xf0]  ;;  %v2336_v32 = vld [vmem:[#allocation14 + $0x9c] sm:$0xf0] }
  0xe4   :  { %1080 = vmatmul.bf16.vlgmr.msra.gmra.mxu2 %v3124_v58  ;;  %v446_v39 = vadd.f32 %v445_v36, %v3108_v11  ;;  %v459_v40 = vadd.f32 %v458_v37, %v3113_v20  ;;  %1124 = vmatpush.bf16.msra.mxu1 %v2148_v19  ;;  %v2668_v20 = vld [vmem:[#allocation14 + $0xb0] sm:$0xf0]  ;;  %v1979_v19 = vld [vmem:[#allocation11 + $0x20] sm:$0xf]  ;;  %v1967_v36 = vld [vmem:[#allocation11 + $0x8] sm:$0xf] }
  0xe5   :  { %1141 = vmatpush.bf16.msrb.mxu2 %v2196_v23  ;;  %v2347_v2 = vor.u32 %v2668_v20, %v2346_v55  ;;  %v2087_v23 = vld [vmem:[#allocation11 + $0xf8] sm:$0xf]  ;;  %v1980_v29 = vor.u32 %v2576_v22, %v1979_v19  ;;  %v2573_v37 = vld [vmem:[#allocation11 + $0x10] sm:$0xf0]  ;;  %v2716_v55 = vld [vmem:[#allocation14 + $0x230] sm:$0xf0] }
  0xe6   :  { %v483_v44 = vadd.f32 %v469_v26, %v446_v39  ;;  %1113 = vmatpush.bf16.msra.mxu0 %v2028_v28  ;;  %v484_v48 = vadd.f32 %v470_v35, %v459_v40  ;;  %v2322_v26 = vld [vmem:[#allocation14 + $0x78] sm:$0xf]  ;;  %v2351_v28 = vor.u32 %v2667_v16, %v2348_v17  ;;  %v2088_v35 = vor.u32 %v2603_v24, %v2087_v23  ;;  %v2442_v39 = vld [vmem:[#allocation14 + $0x168] sm:$0xf]  ;;  %v2692_v40 = vld [vmem:[#allocation14 + $0x170] sm:$0xf0] }
  0xe7   :  { %v1968_v42 = vor.u32 %v2573_v37, %v1967_v36  ;;  %v2443_v46 = vor.u32 %v2692_v40, %v2442_v39  ;;  %v2298_v20 = vld [vmem:[#allocation14 + $0x48] sm:$0xf]  ;;  %v2650_v16 = vld [vmem:[#allocation14 + $0x20] sm:$0xf0]  ;;  %v2680_v22 = vld [vmem:[#allocation14 + $0x110] sm:$0xf0] }
  0xe8   :  { %v490_v51 = vmax.f32 %v483_v44, 0.0  ;;  %1125 = vmatpush.bf16.msra.mxu1 %v2136_v41  ;;  %v491_v11 = vmax.f32 %v484_v48, 0.0  ;;  %v2323_v41 = vor.u32 %v2662_v27, %v2322_v26  ;;  %v2659_v44 = vld [vmem:[#allocation14 + $0x68] sm:$0xf0]  ;;  %v2324_v48 = vld [vmem:[#allocation14 + $0x84] sm:$0xf0] }
  0xe9   :  { %1142 = vmatpush.bf16.msrb.mxu2 %v2184_v15  ;;  %v2339_v15 = vor.u32 %v2664_v31, %v2336_v32  ;;  %v2327_v57 = vor.u32 %v2661_v47, %v2324_v48  ;;  %v2394_v19 = vld [vmem:[#allocation14 + $0x108] sm:$0xf]  ;;  %v2707_v26 = vld [vmem:[#allocation14 + $0x1e8] sm:$0xf0]  ;;  %v2262_v27 = vld [vmem:[#allocation14] sm:$0xf] }
  0xea   :  { %v1167_v53 = vpack.c.bf16 %v490_v51, %v490_v51  ;;  %1114 = vmatpush.bf16.msra.mxu0 %v2016_v45  ;;  %v1168_v60 = vpack.c.bf16 %v491_v11, %v491_v11  ;;  %v2063_v45 = vld [vmem:[#allocation11 + $0xc8] sm:$0xf]  ;;  %v2689_v51 = vld [vmem:[#allocation14 + $0x158] sm:$0xf0]  ;;  %v2538_v11 = vld [vmem:[#allocation14 + $0x228] sm:$0xf] }
  0xeb   :  { %v460_v63 = vpop.f32.mrf.mxu1  ;;  %v447_v0 = vpop.f32.mrf.mxu0  ;;  %v2064_v34 = vor.u32 %v2597_v49, %v2063_v45  ;;  %v2444_v31 = vld [vmem:[#allocation14 + $0x174] sm:$0xf0]  ;;  %v2382_v32 = vld [vmem:[#allocation14 + $0xf0] sm:$0xf]  ;;  %v2420_v47 = vld [vmem:[#allocation14 + $0x144] sm:$0xf0] }
  0xec   :  { %1126 = vmatpush.bf16.msra.mxu1 %v2124_v52  ;;  %1287 = vrot.lane.b32.xlu0 %v1168_v60, %s2990_s8  ;;  %v2311_v52 = vor.u32 %v2659_v44, %v2310_v43  ;;  %v2658_v60 = vld [vmem:[#allocation14 + $0x64] sm:$0xf]  ;;  %v2539_v0 = vor.u32 %v2716_v55, %v2538_v11  ;;  %v2358_v48 = vld [vmem:[#allocation14 + $0xc0] sm:$0xf]  ;;  %v2671_v49 = vld [vmem:[#allocation14 + $0xc8] sm:$0xf0] }
  0xed   :  { %1143 = vmatpush.bf16.msrb.mxu2 %v2172_v56  ;;  %1093 = vmatmul.bf16.vlgmr.msra.gmra.mxu3 %v3126_v59  ;;  %v2656_v56 = vld [vmem:[#allocation14 + $0x50] sm:$0xf0]  ;;  %v2686_v63 = vld [vmem:[#allocation14 + $0x140] sm:$0xf0]  ;;  %v2315_v6 = vor.u32 %v2658_v60, %v2312_v61  ;;  %v2359_v11 = vor.u32 %v2671_v49, %v2358_v48 }
  0xee   :  { %2258 = vmatmul.msk.bf16.vlgmr.msrb.gmra.mxu0 %vm367_vm2, %v3131_v21  ;;  %1285 = vrot.lane.b32.xlu1 %v1167_v53, %s2990_s8  ;;  %v2431_v53 = vor.u32 %v2689_v51, %v2430_v50  ;;  %v2419_v7 = vor.u32 %v2686_v63, %v2418_v62  ;;  %v2674_v43 = vld [vmem:[#allocation14 + $0xe0] sm:$0xf0]  ;;  %v2715_v50 = vld [vmem:[#allocation14 + $0x22c] sm:$0xf]  ;;  %v2540_v51 = vld [vmem:[#allocation14 + $0x234] sm:$0xf0] }
  0xef   :  { %1115 = vmatpush.bf16.msra.mxu0 %v2004_v1  ;;  %1699 = vmatpush.bf16.msra.mxu3 %v2347_v2  ;;  %v2299_v1 = vor.u32 %v2656_v56, %v2298_v20  ;;  %v2526_v2 = vld [vmem:[#allocation14 + $0x210] sm:$0xf]  ;;  %v2543_v55 = vor.u32 %v2715_v50, %v2540_v51  ;;  %v2701_v56 = vld [vmem:[#allocation14 + $0x1b8] sm:$0xf0]  ;;  %v2652_v61 = vld [vmem:[#allocation14 + $0x34] sm:$0xf] }
  0xf0   :  { %1127 = vmatpush.bf16.msra.mxu1 %v2112_v5  ;;  %v2653_v5 = vld [vmem:[#allocation14 + $0x38] sm:$0xf0]  ;;  %v2527_v13 = vor.u32 %v2713_v3, %v2526_v2  ;;  %v2478_v20 = vld [vmem:[#allocation14 + $0x1b0] sm:$0xf]  ;;  %v2288_v62 = vld [vmem:[#allocation14 + $0x3c] sm:$0xf0] }
  0xf1   :  { %1144 = vmatpush.bf16.msrb.mxu2 %v2160_v8  ;;  %v2655_v8 = vld [vmem:[#allocation14 + $0x4c] sm:$0xf]  ;;  %v2287_v14 = vor.u32 %v2653_v5, %v2286_v4  ;;  %v2291_v63 = vor.u32 %v2652_v61, %v2288_v62  ;;  %v2466_v3 = vld [vmem:[#allocation14 + $0x198] sm:$0xf]  ;;  %v2698_v4 = vld [vmem:[#allocation14 + $0x1a0] sm:$0xf0] }
  0xf2   :  { %v2303_v17 = vor.u32 %v2655_v8, %v2300_v9  ;;  %v2709_v5 = vld [vmem:[#allocation14 + $0x1fc] sm:$0xf]  ;;  %v2450_v50 = vld [vmem:[#allocation14 + $0x170] sm:$0xf] }
  0xf3   :  { %1116 = vmatpush.bf16.msra.mxu0 %v1992_v10  ;;  %1067 = vmatmul.bf16.vlgmr.msrb.gmra.mxu1 %v3116_v30  ;;  %v2274_v10 = vld [vmem:[#allocation14 + $0x18] sm:$0xf]  ;;  %v2649_v9 = vld [vmem:[#allocation14 + $0x1c] sm:$0xf] }
  0xf4   :  { %1145 = vmatmul.bf16.vlgmr.msrb.gmra.mxu2 %v3126_v59  ;;  %1128 = vmatpush.bf16.msra.mxu1 %v2100_v18  ;;  %v2076_v59 = vor.u32 %v2600_v33, %v2075_v38  ;;  %v2275_v24 = vor.u32 %v2650_v16, %v2274_v10  ;;  %v2490_v38 = vld [vmem:[#allocation14 + $0x1c8] sm:$0xf]  ;;  %v2704_v33 = vld [vmem:[#allocation14 + $0x1d0] sm:$0xf0]  ;;  %v2695_v10 = vld [vmem:[#allocation14 + $0x188] sm:$0xf0] }
  0xf5   :  { %1745 = vmatpush.bf16.msra.mxu2 %v2551_v54  ;;  %1281 = vrot.lane.b32.xlu0 %v3131_v21, %s2990_s8  ;;  %v2710_v54 = vld [vmem:[#allocation14 + $0x200] sm:$0xf0]  ;;  %v2491_v44 = vor.u32 %v2704_v33, %v2490_v38  ;;  %v2700_v33 = vld [vmem:[#allocation14 + $0x1b4] sm:$0xf]  ;;  %v2693_v51 = vld [vmem:[#allocation14 + $0x178] sm:$0xf0] }
  0xf6   :  { %1700 = vmatpush.bf16.msra.mxu3 %v2335_v25  ;;  %v2502_v25 = vld [vmem:[#allocation14 + $0x1e0] sm:$0xf]  ;;  %v2706_v16 = vld [vmem:[#allocation14 + $0x1e4] sm:$0xf] }
  0xf7   :  { %1117 = vmatpush.bf16.msra.mxu0 %v1980_v29  ;;  %v2395_v29 = vor.u32 %v2680_v22, %v2394_v19  ;;  %v2503_v36 = vor.u32 %v2707_v26, %v2502_v25  ;;  %v2646_v22 = vld [vmem:[#allocation14 + $0x4] sm:$0xf]  ;;  %v2676_v25 = vld [vmem:[#allocation14 + $0xf4] sm:$0xf]  ;;  %v2384_v26 = vld [vmem:[#allocation14 + $0xfc] sm:$0xf0] }
  0xf8   :  { %1129 = vmatpush.bf16.msra.mxu1 %v2088_v35  ;;  %v2677_v35 = vld [vmem:[#allocation14 + $0xf8] sm:$0xf0] }
  0xf9   :  { %1751 = vmatpush.bf16.msrb.mxu2 %v2351_v28  ;;  %v2647_v28 = vld [vmem:[#allocation14 + $0x8] sm:$0xf0]  ;;  %v2383_v40 = vor.u32 %v2677_v35, %v2382_v32  ;;  %v2492_v32 = vld [vmem:[#allocation14 + $0x1d4] sm:$0xf0] }
  0xfa   :  { %1701 = vmatpush.bf16.msra.mxu3 %v2323_v41  ;;  %v2263_v37 = vor.u32 %v2647_v28, %v2262_v27  ;;  %v2688_v41 = vld [vmem:[#allocation14 + $0x154] sm:$0xf]  ;;  %v2718_v27 = vld [vmem:[#allocation14 + $0x244] sm:$0xf]  ;;  %v2387_v28 = vor.u32 %v2676_v25, %v2384_v26 }
  0xfb   :  { %1118 = vmatpush.bf16.msra.mxu0 %v1968_v42  ;;  %v2370_v42 = vld [vmem:[#allocation14 + $0xd8] sm:$0xf]  ;;  %v2714_v25 = vld [vmem:[#allocation14 + $0x220] sm:$0xf0] }
  0xfc   :  { %1130 = vmatpush.bf16.msra.mxu1 %v2076_v59  ;;  %v2371_v45 = vor.u32 %v2674_v43, %v2370_v42  ;;  %v2697_v43 = vld [vmem:[#allocation14 + $0x19c] sm:$0xf] }
  0xfd   :  { %1752 = vmatpush.bf16.msrb.mxu2 %v2339_v15  ;;  %2259 = vmatmul.msk.bf16.vlgmr.msrb.gmra.mxu3 %vm367_vm2, %v3131_v21  ;;  %v2683_v21 = vld [vmem:[#allocation14 + $0x128] sm:$0xf0]  ;;  %v2432_v15 = vld [vmem:[#allocation14 + $0x15c] sm:$0xf0] }
  0xfe   :  { %1119 = vmatmul.bf16.vlgmr.msra.gmra.mxu0 %v3116_v30  ;;  %1702 = vmatpush.bf16.msra.mxu3 %v2311_v52  ;;  %v2514_v30 = vld [vmem:[#allocation14 + $0x1f8] sm:$0xf]  ;;  %v2407_v18 = vor.u32 %v2683_v21, %v2406_v12  ;;  %v2435_v59 = vor.u32 %v2688_v41, %v2432_v15  ;;  %v2276_v12 = vld [vmem:[#allocation14 + $0x24] sm:$0xf0]  ;;  %v2679_v21 = vld [vmem:[#allocation14 + $0x10c] sm:$0xf] }
  0xff   :  { %1712 = vmatpush.bf16.msrb.mxu0 %v2443_v46  ;;  %v2515_v23 = vor.u32 %v2710_v54, %v2514_v30  ;;  %v2685_v46 = vld [vmem:[#allocation14 + $0x13c] sm:$0xf]  ;;  %v2454_v54 = vld [vmem:[#allocation14 + $0x180] sm:$0xf]  ;;  %v2670_v41 = vld [vmem:[#allocation14 + $0xc4] sm:$0xf] }
 0x100   :  { %1131 = vmatpush.bf16.msra.mxu1 %v2064_v34  ;;  %v2423_v52 = vor.u32 %v2685_v46, %v2420_v47  ;;  %v2479_v34 = vor.u32 %v2701_v56, %v2478_v20  ;;  %v2360_v15 = vld [vmem:[#allocation14 + $0xcc] sm:$0xf0]  ;;  %v2669_v20 = vld [vmem:[#allocation14 + $0xb8] sm:$0xf0]  ;;  %v2438_v56 = vld [vmem:[#allocation14 + $0x158] sm:$0xf] }
 0x101   :  { %1753 = vmatpush.bf16.msrb.mxu2 %v2327_v57  ;;  %v2712_v57 = vld [vmem:[#allocation14 + $0x214] sm:$0xf]  ;;  %v2363_v42 = vor.u32 %v2670_v41, %v2360_v15  ;;  %v2456_v46 = vld [vmem:[#allocation14 + $0x18c] sm:$0xf0]  ;;  %v2522_v41 = vld [vmem:[#allocation14 + $0x200] sm:$0xf] }
 0x102   :  { %1703 = vmatpush.bf16.msra.mxu3 %v2299_v1  ;;  %v2408_v1 = vld [vmem:[#allocation14 + $0x12c] sm:$0xf0]  ;;  %v2711_v15 = vld [vmem:[#allocation14 + $0x208] sm:$0xf0] }
 0x103   :  { %1713 = vmatpush.bf16.msrb.mxu0 %v2431_v53  ;;  %1132 = vmatmul.bf16.vlgmr.msra.gmra.mxu1 %v3124_v58  ;;  %v2691_v58 = vld [vmem:[#allocation14 + $0x16c] sm:$0xf]  ;;  %v2528_v53 = vld [vmem:[#allocation14 + $0x21c] sm:$0xf0] }
 0x104   :  { %1725 = vmatpush.bf16.msrb.mxu1 %v2539_v0  ;;  %v2447_v39 = vor.u32 %v2691_v58, %v2444_v31  ;;  %v2531_v60 = vor.u32 %v2712_v57, %v2528_v53  ;;  %v2682_v0 = vld [vmem:[#allocation14 + $0x124] sm:$0xf]  ;;  %v2703_v31 = vld [vmem:[#allocation14 + $0x1cc] sm:$0xf]  ;;  %v2720_v53 = vld [vmem:[#allocation14 + $0x250] sm:$0xf0] }
 0x105   :  { %1754 = vmatpush.bf16.msrb.mxu2 %v2315_v6  ;;  %v2411_v2 = vor.u32 %v2682_v0, %v2408_v1  ;;  %v2467_v6 = vor.u32 %v2698_v4, %v2466_v3  ;;  %v2495_v35 = vor.u32 %v2703_v31, %v2492_v32  ;;  %v2690_v57 = vld [vmem:[#allocation14 + $0x160] sm:$0xf0]  ;;  %v2342_v4 = vld [vmem:[#allocation14 + $0x98] sm:$0xf]  ;;  %v2660_v31 = vld [vmem:[#allocation14 + $0x70] sm:$0xf0] }
 0x106   :  { %1704 = vmatpush.bf16.msra.mxu3 %v2287_v14  ;;  %v2396_v14 = vld [vmem:[#allocation14 + $0x114] sm:$0xf0]  ;;  %v2439_v3 = vor.u32 %v2690_v57, %v2438_v56  ;;  %v2402_v32 = vld [vmem:[#allocation14 + $0x110] sm:$0xf]  ;;  %v2708_v56 = vld [vmem:[#allocation14 + $0x1f0] sm:$0xf0] }
 0x107   :  { %1714 = vmatpush.bf16.msrb.mxu0 %v2419_v7  ;;  %v2516_v7 = vld [vmem:[#allocation14 + $0x204] sm:$0xf0]  ;;  %v2399_v30 = vor.u32 %v2679_v21, %v2396_v14  ;;  %v2717_v14 = vld [vmem:[#allocation14 + $0x238] sm:$0xf0]  ;;  %v2378_v57 = vld [vmem:[#allocation14 + $0xe0] sm:$0xf] }
 0x108   :  { %1726 = vmatpush.bf16.msrb.mxu1 %v2527_v13  ;;  %v2519_v8 = vor.u32 %v2709_v5, %v2516_v7  ;;  %v2279_v13 = vor.u32 %v2649_v9, %v2276_v12  ;;  %v2666_v5 = vld [vmem:[#allocation14 + $0xa0] sm:$0xf0]  ;;  %v2687_v9 = vld [vmem:[#allocation14 + $0x148] sm:$0xf0] }
 0x109   :  { %1755 = vmatpush.bf16.msrb.mxu2 %v2303_v17  ;;  %v2455_v17 = vor.u32 %v2695_v10, %v2454_v54  ;;  %v2343_v21 = vor.u32 %v2666_v5, %v2342_v4  ;;  %v2330_v54 = vld [vmem:[#allocation14 + $0x80] sm:$0xf]  ;;  %v2663_v10 = vld [vmem:[#allocation14 + $0x88] sm:$0xf0] }
 0x10a   :  { %1705 = vmatpush.bf16.msra.mxu3 %v2275_v24  ;;  %v2651_v5 = vld [vmem:[#allocation14 + $0x28] sm:$0xf0] }
 0x10b   :  { %1715 = vmatpush.bf16.msrb.mxu0 %v2407_v18  ;;  %v2504_v18 = vld [vmem:[#allocation14 + $0x1ec] sm:$0xf0] }
 0x10c   :  { %1727 = vmatpush.bf16.msrb.mxu1 %v2515_v23  ;;  %v2507_v19 = vor.u32 %v2706_v16, %v2504_v18  ;;  %v2264_v23 = vld [vmem:[#allocation14 + $0xc] sm:$0xf0]  ;;  %v2414_v16 = vld [vmem:[#allocation14 + $0x128] sm:$0xf] }
 0x10d   :  { %1756 = vmatpush.bf16.msrb.mxu2 %v2291_v63  ;;  %v2267_v24 = vor.u32 %v2646_v22, %v2264_v23  ;;  %v2331_v23 = vor.u32 %v2663_v10, %v2330_v54 }
 0x10e   :  { %1706 = vmatpush.bf16.msra.mxu3 %v2263_v37  ;;  %v2372_v37 = vld [vmem:[#allocation14 + $0xe4] sm:$0xf0] }
 0x10f   :  { %1716 = vmatpush.bf16.msrb.mxu0 %v2395_v29  ;;  %v2552_v29 = vld [vmem:[#allocation14 + $0x24c] sm:$0xf0] }
 0x110   :  { %1728 = vmatpush.bf16.msrb.mxu1 %v2503_v36  ;;  %v2555_v58 = vor.u32 %v2718_v27, %v2552_v29  ;;  %v2673_v36 = vld [vmem:[#allocation14 + $0xdc] sm:$0xf] }
 0x111   :  { %1757 = vmatpush.bf16.msrb.mxu2 %v2279_v13  ;;  %v2375_v38 = vor.u32 %v2673_v36, %v2372_v37  ;;  %v2546_v13 = vld [vmem:[#allocation14 + $0x230] sm:$0xf] }
 0x112   :  { %1764 = vmatpush.bf16.msrb.mxu3 %v2447_v39  ;;  %v2480_v39 = vld [vmem:[#allocation14 + $0x1bc] sm:$0xf0]  ;;  %v2547_v18 = vor.u32 %v2717_v14, %v2546_v13 }
 0x113   :  { %1717 = vmatpush.bf16.msrb.mxu0 %v2383_v40  ;;  %v2483_v40 = vor.u32 %v2700_v33, %v2480_v39  ;;  %v2306_v33 = vld [vmem:[#allocation14 + $0x50] sm:$0xf] }
 0x114   :  { %1729 = vmatpush.bf16.msrb.mxu1 %v2491_v44  ;;  %v2468_v44 = vld [vmem:[#allocation14 + $0x1a4] sm:$0xf0] }
 0x115   :  { %1758 = vmatpush.bf16.msrb.mxu2 %v2267_v24  ;;  %v2534_v24 = vld [vmem:[#allocation14 + $0x218] sm:$0xf] }
 0x116   :  { %1765 = vmatpush.bf16.msrb.mxu3 %v2435_v59  ;;  %v2471_v59 = vor.u32 %v2697_v43, %v2468_v44  ;;  %v2535_v36 = vor.u32 %v2714_v25, %v2534_v24  ;;  %v2390_v43 = vld [vmem:[#allocation14 + $0xf8] sm:$0xf]  ;;  %v2678_v44 = vld [vmem:[#allocation14 + $0x100] sm:$0xf0]  ;;  %v2648_v24 = vld [vmem:[#allocation14 + $0x10] sm:$0xf0] }
 0x117   :  { %1718 = vmatpush.bf16.msrb.mxu0 %v2371_v45  ;;  %v2694_v45 = vld [vmem:[#allocation14 + $0x184] sm:$0xf]  ;;  %v2486_v25 = vld [vmem:[#allocation14 + $0x1b8] sm:$0xf] }
 0x118   :  { %1730 = vmatpush.bf16.msrb.mxu1 %v2479_v34  ;;  %v2459_v47 = vor.u32 %v2694_v45, %v2456_v46  ;;  %v2558_v34 = vld [vmem:[#allocation14 + $0x248] sm:$0xf] }
 0x119   :  { %v2559_v0 = vor.u32 %v2720_v53, %v2558_v34  ;;  %v2675_v34 = vld [vmem:[#allocation14 + $0xe8] sm:$0xf0] }
 0x11a   :  { %1766 = vmatpush.bf16.msrb.mxu3 %v2423_v52  ;;  %v2379_v4 = vor.u32 %v2675_v34, %v2378_v57 }
 0x11b   :  { %1719 = vmatpush.bf16.msrb.mxu0 %v2359_v11  ;;  %v2451_v11 = vor.u32 %v2693_v51, %v2450_v50 }
 0x11c   :  { %1731 = vmatpush.bf16.msrb.mxu1 %v2467_v6 }
 0x11e   :  { %1767 = vmatpush.bf16.msrb.mxu3 %v2411_v2 }
 0x11f   :  { %1777 = vmatpush.bf16.msra.mxu0 %v2543_v55  ;;  %v2354_v55 = vld [vmem:[#allocation14 + $0xb0] sm:$0xf] }
 0x120   :  { %1732 = vmatpush.bf16.msrb.mxu1 %v2455_v17  ;;  %v2355_v63 = vor.u32 %v2669_v20, %v2354_v55  ;;  %v2684_v17 = vld [vmem:[#allocation14 + $0x130] sm:$0xf0]  ;;  %v2654_v55 = vld [vmem:[#allocation14 + $0x40] sm:$0xf0]  ;;  %v2510_v20 = vld [vmem:[#allocation14 + $0x1e8] sm:$0xf] }
 0x121   :  { %v2415_v29 = vor.u32 %v2684_v17, %v2414_v16  ;;  %v2270_v16 = vld [vmem:[#allocation14 + $0x8] sm:$0xf] }
 0x122   :  { %1768 = vmatpush.bf16.msrb.mxu3 %v2399_v30 }
 0x123   :  { %1778 = vmatpush.bf16.msra.mxu0 %v2531_v60 }
 0x124   :  { %1797 = vmatpush.bf16.msra.mxu1 %v2555_v58  ;;  %v2318_v58 = vld [vmem:[#allocation14 + $0x68] sm:$0xf] }
 0x126   :  { %1769 = vmatpush.bf16.msrb.mxu3 %v2387_v28 }
 0x127   :  { %1779 = vmatpush.bf16.msra.mxu0 %v2519_v8  ;;  %v2426_v8 = vld [vmem:[#allocation14 + $0x140] sm:$0xf] }
 0x128   :  { %v2427_v30 = vor.u32 %v2687_v9, %v2426_v8  ;;  %v2498_v8 = vld [vmem:[#allocation14 + $0x1d0] sm:$0xf]  ;;  %v2705_v9 = vld [vmem:[#allocation14 + $0x1d8] sm:$0xf0] }
 0x129   :  { %v2499_v10 = vor.u32 %v2705_v9, %v2498_v8 }
 0x12a   :  { %1770 = vmatpush.bf16.msrb.mxu3 %v2375_v38  ;;  %v2319_v38 = vor.u32 %v2660_v31, %v2318_v58 }
 0x12b   :  { %1780 = vmatpush.bf16.msra.mxu0 %v2507_v19 }
 0x12e   :  { %1771 = vmatpush.bf16.msrb.mxu3 %v2363_v42  ;;  %v3183_v42 = vld [vmem:[#allocation13] sm:$0x7] }
 0x12f   :  { %1781 = vmatpush.bf16.msra.mxu0 %v2495_v35  ;;  %v2681_v35 = vld [vmem:[#allocation14 + $0x118] sm:$0xf0]  ;;  %v598_v53 = vperm.slane %v3183_v42, 0 }
 0x130   :  { %v2403_v39 = vor.u32 %v2681_v35, %v2402_v32  ;;  %v2699_v32 = vld [vmem:[#allocation14 + $0x1a8] sm:$0xf0]  ;;  %v3200_v35 = vld [vmem:[%s3232_s9] sm:$0x3f]  ;;  %s1878_s9 = sld [smem:[#allocation17]] }
 0x133   :  { %1782 = vmatpush.bf16.msra.mxu0 %v2483_v40  ;;  %v2657_v40 = vld [vmem:[#allocation14 + $0x58] sm:$0xf0] }
 0x134   :  { %v2307_v46 = vor.u32 %v2657_v40, %v2306_v33 }
 0x137   :  { %1783 = vmatpush.bf16.msra.mxu0 %v2471_v59  ;;  %v599_v59 = vperm.slane %v3183_v42, 1 }
 0x13b   :  { %1784 = vmatpush.bf16.msra.mxu0 %v2459_v47  ;;  %v2523_v47 = vor.u32 %v2711_v15, %v2522_v41 }
 0x155   :  { %v1284_v49 = vpop.permute.xlu1 %1283 }
 0x156   :  { %v3154_v48 = vpop.f32.mrf.mxu2 }
 0x157   :  { %v1017_v13 = vadd.f32 %v3154_v48, %v598_v53 }
 0x15a   :  { %v3156_v52 = vpop.f32.mrf.mxu0 }
 0x15e   :  { %v1018_v60 = vpop.f32.mrf.mxu2  ;;  %v3158_v61 = vpop.permute.xlu0 %1287 }
 0x15f   :  { %v3160_v62 = vpop.f32.mrf.mxu3  ;;  %2560 = vmatmul.msk.bf16.vlgmr.msra.gmra.mxu2 %vm367_vm2, %v3158_v61 }
 0x160   :  { %v1286_v1 = vpop.permute.xlu1 %1285  ;;  %v3164_v2 = vpop.f32.mrf.mxu1  ;;  %1816 = vmatpush.bf16.msra.mxu2 %v2451_v11  ;;  %v2391_v11 = vor.u32 %v2678_v44, %v2390_v43  ;;  %v1030_v17 = vadd.f32 %v3160_v62, %v1017_v13  ;;  %v2474_v62 = vld [vmem:[#allocation14 + $0x1a0] sm:$0xf]  ;;  %v2462_v43 = vld [vmem:[#allocation14 + $0x188] sm:$0xf]  ;;  %v2696_v44 = vld [vmem:[#allocation14 + $0x190] sm:$0xf0] }
 0x161   :  { %v3167_v6 = vsel %vm1289_vm3, %v1284_v49, %v1286_v1  ;;  %v3171_v7 = vsel %vm1289_vm3, %v1286_v1, %v3158_v61  ;;  %v2511_v1 = vor.u32 %v2708_v56, %v2510_v20  ;;  %v2475_v40 = vor.u32 %v2699_v32, %v2474_v62 }
 0x162   :  { %1720 = vmatmul.bf16.vlgmr.msrb.gmra.mxu0 %v3167_v6  ;;  %1733 = vmatmul.bf16.vlgmr.msrb.gmra.mxu1 %v3171_v7  ;;  %v1044_v12 = vpop.f32.mrf.mxu0  ;;  %v1043_v31 = vadd.f32 %v3156_v52, %v1030_v17  ;;  %v1860_v52 = vperm.slane %v3200_v35, 0 }
 0x163   :  { %1803 = vmatpush.bf16.msrb.mxu1 %v2355_v63  ;;  %1849 = vmatpush.bf16.msrb.mxu0 %v2559_v0  ;;  %v2366_v12 = vld [vmem:[#allocation14 + $0xc8] sm:$0xf] }
 0x164   :  { %1817 = vmatpush.bf16.msra.mxu2 %v2439_v3  ;;  %v2282_v3 = vld [vmem:[#allocation14 + $0x20] sm:$0xf]  ;;  %v1056_v41 = vadd.f32 %v3164_v2, %v1043_v31 }
 0x165   :  { %v2283_v54 = vor.u32 %v2651_v5, %v2282_v3 }
 0x167   :  { %v3175_v19 = vpop.f32.mrf.mxu2  ;;  %1804 = vmatpush.bf16.msrb.mxu1 %v2343_v21  ;;  %v1282_v22 = vpop.permute.xlu0 %1281  ;;  %v2672_v21 = vld [vmem:[#allocation14 + $0xd0] sm:$0xf0] }
 0x168   :  { %v3178_v26 = vsel %vm1289_vm3, %v1282_v22, %v1284_v49  ;;  %v1031_v27 = vpop.f32.mrf.mxu3  ;;  %v1057_v28 = vpop.f32.mrf.mxu1  ;;  %1818 = vmatpush.bf16.msra.mxu2 %v2427_v30  ;;  %v2294_v49 = vld [vmem:[#allocation14 + $0x38] sm:$0xf] }
 0x169   :  { %1707 = vmatmul.bf16.vlgmr.msra.gmra.mxu3 %v3178_v26  ;;  %v2295_v0 = vor.u32 %v2654_v55, %v2294_v49  ;;  %v2702_v27 = vld [vmem:[#allocation14 + $0x1c0] sm:$0xf0]  ;;  %v2463_v49 = vor.u32 %v2696_v44, %v2462_v43  ;;  %v1883_v43 = vperm.slane %v3200_v35, 5 }
 0x16a   :  { %1829 = vmatpush.bf16.msra.mxu3 %v2547_v18  ;;  %v2487_v58 = vor.u32 %v2702_v27, %v2486_v25  ;;  %v1879_v25 = vstv %s1878_s9 }
 0x16b   :  { %v3181_v37 = vpop.f32.mrf.mxu0  ;;  %1805 = vmatpush.bf16.msrb.mxu1 %v2331_v23  ;;  %v2367_v23 = vor.u32 %v2672_v21, %v2366_v12 }
 0x16c   :  { %1819 = vmatpush.bf16.msra.mxu2 %v2415_v29  ;;  %v2271_v29 = vor.u32 %v2648_v24, %v2270_v16 }
 0x16e   :  { %1830 = vmatpush.bf16.msra.mxu3 %v2535_v36 }
 0x16f   :  { %v1083_v45 = vpop.f32.mrf.mxu2  ;;  %1806 = vmatpush.bf16.msrb.mxu1 %v2319_v38  ;;  %1759 = vmatmul.bf16.vlgmr.msrb.gmra.mxu2 %v3178_v26  ;;  %v1861_v38 = vperm.slane %v3200_v35, 2 }
 0x170   :  { %v1068_v50 = vpop.f32.mrf.mxu1  ;;  %v1094_v51 = vpop.f32.mrf.mxu3  ;;  %1820 = vmatpush.bf16.msra.mxu2 %v2403_v39 }
 0x171   :  { %v1069_v60 = vadd.f32 %v1068_v50, %v599_v59  ;;  %v1163_v50 = vmax.f32 %v1056_v41, 0.0 }
 0x172   :  { %1785 = vmatmul.bf16.vlgmr.msra.gmra.mxu0 %v3171_v7  ;;  %2561 = vmatmul.msk.bf16.vlgmr.msra.gmra.mxu1 %vm367_vm2, %v3158_v61 }
 0x173   :  { %v1109_v63 = vpop.f32.mrf.mxu0  ;;  %1807 = vmatpush.bf16.msrb.mxu1 %v2307_v46  ;;  %1831 = vmatpush.bf16.msra.mxu3 %v2523_v47  ;;  %v1082_v14 = vadd.f32 %v3175_v19, %v1069_v60  ;;  %v600_v19 = vperm.slane %v3183_v42, 2  ;;  %v1867_v46 = vperm.slane %v1861_v38, 0 }
 0x174   :  { %1821 = vmatpush.bf16.msra.mxu2 %v2391_v11 }
 0x175   :  { %v1095_v48 = vadd.f32 %v1094_v51, %v1082_v14  ;;  %v1866_v51 = vperm.slane %v1860_v52, 0 }
 0x177   :  { %v1146_v30 = vpop.f32.mrf.mxu2  ;;  %1808 = vmatpush.bf16.msrb.mxu1 %v2295_v0  ;;  %1832 = vmatpush.bf16.msra.mxu3 %v2511_v1  ;;  %v1108_v36 = vadd.f32 %v3181_v37, %v1095_v48  ;;  %v1862_v37 = vperm.slane %v3200_v35, 4  ;;  %v1869_v56 = vmul.f32 %v1866_v51, %v1163_v50 }
 0x178   :  { %v1070_v18 = vpop.f32.mrf.mxu1  ;;  %v1096_v22 = vpop.f32.mrf.mxu3  ;;  %1822 = vmatpush.bf16.msra.mxu2 %v2379_v4 }
 0x179   :  { %1772 = vmatmul.bf16.vlgmr.msrb.gmra.mxu3 %v3167_v6  ;;  %v1164_v45 = vmax.f32 %v1108_v36, 0.0 }
 0x17b   :  { %v1120_v28 = vpop.f32.mrf.mxu0  ;;  %1809 = vmatpush.bf16.msrb.mxu1 %v2283_v54  ;;  %1833 = vmatpush.bf16.msra.mxu3 %v2499_v10  ;;  %v1870_v55 = vmul.f32 %v1867_v46, %v1164_v45 }
 0x17c   :  { %1823 = vmatpush.bf16.msra.mxu2 %v2367_v23  ;;  %v1121_v33 = vadd.f32 %v1120_v28, %v600_v19 }
 0x17f   :  { %v1148_v39 = vpop.f32.mrf.mxu2  ;;  %1810 = vmatpush.bf16.msrb.mxu1 %v2271_v29  ;;  %1834 = vmatpush.bf16.msra.mxu3 %v2487_v58 }
 0x180   :  { %v1133_v15 = vpop.f32.mrf.mxu1  ;;  %v1159_v42 = vpop.f32.mrf.mxu3  ;;  %1824 = vmatmul.bf16.vlgmr.msra.gmra.mxu2 %v3167_v6  ;;  %v1868_v6 = vperm.slane %v1862_v37, 0  ;;  %v1882_v39 = vperm.slane %v3200_v35, 3 }
 0x181   :  { %v1134_v59 = vadd.f32 %v1133_v15, %v1121_v33  ;;  %v1881_v15 = vperm.slane %v3200_v35, 1  ;;  %v1899_v35 = vstv %s2563_s24 }
 0x182   :  { %1811 = vmatmul.bf16.vlgmr.msrb.gmra.mxu1 %v3178_v26  ;;  %2562 = vmatmul.msk.bf16.vlgmr.msrb.gmra.mxu0 %vm367_vm2, %v3158_v61  ;;  %v1872_v61 = vadd.f32 %v1870_v55, %v1869_v56  ;;  %v1888_v37 = vperm.slane %v1882_v39, 1 }
 0x183   :  { %v1147_v47 = vadd.f32 %v1146_v30, %v1134_v59  ;;  %v1122_v2 = vpop.f32.mrf.mxu0  ;;  %1835 = vmatpush.bf16.msra.mxu3 %v2475_v40 }
 0x185   :  { %v1160_v11 = vadd.f32 %v1159_v42, %v1147_v47  ;;  %v1887_v47 = vperm.slane %v1881_v15, 1 }
 0x187   :  { %v1165_v20 = vmax.f32 %v1160_v11, 0.0  ;;  %1836 = vmatpush.bf16.msra.mxu3 %v2463_v49  ;;  %v1889_v49 = vperm.slane %v1883_v43, 1 }
 0x188   :  { %v1135_v57 = vpop.f32.mrf.mxu1  ;;  %v1161_v34 = vpop.f32.mrf.mxu3 }
 0x189   :  { %v1871_v26 = vmul.f32 %v1868_v6, %v1165_v20 }
 0x18a   :  { %1837 = vmatmul.bf16.vlgmr.msra.gmra.mxu3 %v3171_v7  ;;  %v1269_v7 = vld [vmem:[#allocation16] sm:$0x7] }
 0x18b   :  { %v1874_v53 = vsel %vm1873_vm4, %v1871_v26, 0.0  ;;  %v1271_v10 = vperm.slane %v1269_v7, 0  ;;  %v1272_v16 = vperm.slane %v1269_v7, 1  ;;  %v1273_v62 = vperm.slane %v1269_v7, 2 }
 0x18c   :  { %v1875_v60 = vadd.f32 %v1874_v53, %v1872_v61 }
 0x18e   :  { %1876 = vadd.xlane.f32.xlu2 %v1875_v60 }
 0x1df   :  { %v1721_v63 = vpop.f32.mrf.mxu0  ;;  %v1734_v0 = vpop.f32.mrf.mxu1 }
 0x1e2   :  { %v1747_v1 = vpop.f32.mrf.mxu2 }
 0x1e7   :  { %v1723_v3 = vpop.f32.mrf.mxu0  ;;  %v1736_v4 = vpop.f32.mrf.mxu1 }
 0x1ea   :  { %v1749_v5 = vpop.f32.mrf.mxu2 }
 0x1ec   :  { %v1708_v8 = vpop.f32.mrf.mxu3 }
 0x1ed   :  { %v1709_v18 = vadd.f32 %v1708_v8, %v1271_v10 }
 0x1ef   :  { %v1786_v9 = vpop.f32.mrf.mxu0  ;;  %v1799_v12 = vpop.f32.mrf.mxu1  ;;  %v1722_v28 = vadd.f32 %v1721_v63, %v1709_v18 }
 0x1f1   :  { %v1735_v32 = vadd.f32 %v1734_v0, %v1722_v28 }
 0x1f2   :  { %v1760_v21 = vpop.f32.mrf.mxu2 }
 0x1f3   :  { %v1761_v22 = vadd.f32 %v1760_v21, %v1272_v16  ;;  %v1748_v41 = vadd.f32 %v1747_v1, %v1735_v32 }
 0x1f4   :  { %v1710_v13 = vpop.f32.mrf.mxu3 }
 0x1f5   :  { %v1855_v46 = vmax.f32 %v1748_v41, 0.0 }
 0x1f7   :  { %v1788_v14 = vpop.f32.mrf.mxu0  ;;  %v1801_v30 = vpop.f32.mrf.mxu1  ;;  %v1890_v11 = vmul.f32 %v1887_v47, %v1855_v46 }
 0x1fa   :  { %v1762_v54 = vpop.f32.mrf.mxu2 }
 0x1fc   :  { %v1773_v17 = vpop.f32.mrf.mxu3 }
 0x1fd   :  { %v1774_v27 = vadd.f32 %v1773_v17, %v1761_v22 }
 0x1ff   :  { %v1812_v23 = vpop.f32.mrf.mxu1  ;;  %v1851_v24 = vpop.f32.mrf.mxu0  ;;  %v1787_v31 = vadd.f32 %v1786_v9, %v1774_v27 }
 0x200   :  { %v1813_v40 = vadd.f32 %v1812_v23, %v1273_v62 }
 0x201   :  { %v1877_v48 = vpop.xlane.xlu2 %1876  ;;  %v1800_v33 = vadd.f32 %v1799_v12, %v1787_v31 }
 0x202   :  { %v1880_v19 = vadd.f32 %v1879_v25, %v1877_v48 }
 0x203   :  { %v1825_v29 = vpop.f32.mrf.mxu2  ;;  %v1856_v44 = vmax.f32 %v1800_v33, 0.0 }
 0x204   :  { %1902 = vst.msk [vmem:[%s3234_s11] sm:$0xff] %vm1901_vm5, %v1880_v19  ;;  %v1775_v58 = vpop.f32.mrf.mxu3  ;;  %v1826_v42 = vadd.f32 %v1825_v29, %v1813_v40 }
 0x205   :  { %v1891_v50 = vmul.f32 %v1888_v37, %v1856_v44 }
 0x207   :  { %v1814_v36 = vpop.f32.mrf.mxu1  ;;  %v1853_v38 = vpop.f32.mrf.mxu0  ;;  %v1893_v20 = vadd.f32 %v1891_v50, %v1890_v11 }
 0x20b   :  { %v1827_v52 = vpop.f32.mrf.mxu2 }
 0x20d   :  { %v1838_v59 = vpop.f32.mrf.mxu3 }
 0x20e   :  { %v1839_v45 = vadd.f32 %v1838_v59, %v1826_v42 }
 0x210   :  { %v1852_v2 = vadd.f32 %v1851_v24, %v1839_v45 }
 0x212   :  { %v1857_v51 = vmax.f32 %v1852_v2, 0.0 }
 0x214   :  { %v1892_v6 = vmul.f32 %v1889_v49, %v1857_v51 }
 0x215   :  { %v1840_v55 = vpop.f32.mrf.mxu3 }
 0x216   :  { %v1894_v56 = vsel %vm1873_vm4, %v1892_v6, 0.0 }
 0x217   :  { %v1895_v57 = vadd.f32 %v1894_v56, %v1893_v20 }
 0x219   :  { %1896 = vadd.xlane.f32.xlu2 %v1895_v57 }
 0x28c   :  { %v1897_v34 = vpop.xlane.xlu2 %1896 }
 0x28d   :  { %v1900_v26 = vadd.f32 %v1899_v35, %v1897_v34 }
 0x28f   :  { %1904 = vst.msk [vmem:[%s3234_s11] sm:$0xff] %vm1903_vm6, %v1900_v26 }
 0x290   :  { %1909 = vsyncpa [#allocation3], 1 }
 0x291   :  { %1910 = vsyncpa [#allocation6], 1 }
 0x292   :  { %1911 = vsyncpa [#allocation9], 1 }
 0x293   :  { %1912 = vsyncpa [#allocation12], 1 }
 0x294   :  { %1913 = vsyncpa [#allocation15], 1 }
 0x295   :  { %1914 = vsyncpa [#allocation4], 1 }

</bundles_post_ra>
